<compile_context>
chip_gen: v5e
topology: v5e:2x2
jax: 0.10.0
libtpu: 0.0.40
codegen_flags: <defaults>
</compile_context>

<pallas_src>
import jax
import jax.numpy as jnp
from jax.experimental import pallas as pl
from jax.experimental.pallas import tpu as pltpu

# ----------------------------------------------------------------------------
# Problem sizes implied by the module: out_linear expects 2816 input features
#   4 conv1 branches * 128 * (s1 - 3) + 128 (fc1) + 128 (conv2) = 2816
#   => s1 = 8, channels 0..7 used => s0 = 8.
# ----------------------------------------------------------------------------
S0, S1 = 8, 8                  # state_dim
MID = 128                      # mid_dim
ADIM = 6                       # action_dim (small, arbitrary)
K1 = 4                         # conv1 kernel size
CONV_OUT = S1 - K1 + 1         # 5
CONV_SPLITS = (0, 2, 3, 7)     # channels fed through conv1
MERGE_DIM = 4 * MID * CONV_OUT + MID + MID     # 2816
X_DIM = 4 * S1 + 1 + 3         # 36 distinct input scalars per batch row
X_AUG = X_DIM + 1              # +1 constant-one column carrying the hidden bias
OUT_PAD = 128                  # lane-dense padded output width

# merge-vector offsets, matching torch.cat order in merge_net()
OFF_S0 = 0
OFF_S1 = OFF_S0 + MID * CONV_OUT      # 640   (fc1)
OFF_S2 = OFF_S1 + MID                 # 768
OFF_S3 = OFF_S2 + MID * CONV_OUT      # 1408
OFF_S4 = OFF_S3 + MID * CONV_OUT      # 2048  (conv2)
OFF_S5 = OFF_S4 + MID                 # 2176
CONV_MERGE_OFFS = (OFF_S0, OFF_S2, OFF_S3, OFF_S5)


def _round_up(x, m):
    return (x + m - 1) // m * m


# ----------------------------------------------------------------------------
# Fused Pallas kernel:  out = relu( relu(x37 @ Wh) @ Wo + bo )
# (hidden bias is folded into Wh via the constant-one input column; no scratch,
#  no intermediate VMEM store/reload of h)
# ----------------------------------------------------------------------------
def actor_fused_kernel(x_ref, wh_ref, wo_ref, bo_ref, o_ref):
    h = jnp.dot(x_ref[...], wh_ref[...], preferred_element_type=jnp.float32)
    h = jnp.maximum(h, 0.0).astype(wo_ref.dtype)          # bf16 feed to 2nd MXU pass
    o = jnp.dot(h, wo_ref[...], preferred_element_type=jnp.float32)
    o_ref[...] = jnp.maximum(o + bo_ref[...], 0.0).astype(o_ref.dtype)


# ----------------------------------------------------------------------------
# Trace-time weight expansion: fold conv1 (Toeplitz), fc1, conv2 AND the hidden
# bias into one (X_AUG, MERGE_DIM) weight whose columns match PyTorch's merge
# ordering, and zero-pad out_linear's weight/bias to a 128-lane output.
# ----------------------------------------------------------------------------
def _expand_weights(params, compute_dtype):
    conv1_w, conv1_b, fc1_w, fc1_b, conv2_w, conv2_b, out_w, out_b = params
    f32 = jnp.float32

    wc = conv1_w.reshape(MID, K1).astype(f32)          # (128, 4)
    # Toeplitz block T: T[p, c*CONV_OUT + l] = wc[c, p - l] if 0 <= p-l < K1
    p_idx = jnp.arange(S1)[:, None, None]              # (8,1,1)
    c_idx = jnp.arange(MID)[None, :, None]             # (1,128,1)
    l_idx = jnp.arange(CONV_OUT)[None, None, :]        # (1,1,5)
    k_idx = p_idx - l_idx                              # (8,1,5)
    valid = (k_idx >= 0) & (k_idx < K1)
    toep = jnp.where(valid, wc[c_idx, jnp.clip(k_idx, 0, K1 - 1)], 0.0)
    toep = toep.reshape(S1, MID * CONV_OUT)            # (8, 640)

    wh = jnp.zeros((X_AUG, MERGE_DIM), f32)
    bh = jnp.zeros((MERGE_DIM,), f32)
    bc1 = jnp.repeat(conv1_b.astype(f32), CONV_OUT)    # (640,), bias per (c, l)
    for si, mo in enumerate(CONV_MERGE_OFFS):
        wh = wh.at[si * S1:(si + 1) * S1, mo:mo + MID * CONV_OUT].set(toep)
        bh = bh.at[mo:mo + MID * CONV_OUT].set(bc1)
    # fc1: input column 32
    wh = wh.at[4 * S1, OFF_S1:OFF_S1 + MID].set(fc1_w[:, 0].astype(f32))
    bh = bh.at[OFF_S1:OFF_S1 + MID].set(fc1_b.astype(f32))
    # conv2 (kernel_size=1): input columns 33..35
    wh = wh.at[4 * S1 + 1:4 * S1 + 4, OFF_S4:OFF_S4 + MID].set(
        conv2_w[:, :, 0].T.astype(f32))
    bh = bh.at[OFF_S4:OFF_S4 + MID].set(conv2_b.astype(f32))
    # hidden bias folded into the last row (picked up by the constant-1 column)
    wh = wh.at[X_DIM, :].set(bh)

    wo = jnp.zeros((MERGE_DIM, OUT_PAD), f32).at[:, :ADIM].set(out_w.T.astype(f32))
    bo = jnp.zeros((1, OUT_PAD), f32).at[0, :ADIM].set(out_b.astype(f32))  # kept f32

    return wh.astype(compute_dtype), wo.astype(compute_dtype), bo


# ----------------------------------------------------------------------------
# Wrapper
# ----------------------------------------------------------------------------
def actor_forward(inputs, params, *, compute_dtype=jnp.bfloat16, batch_block=1024):
    x = inputs.reshape(-1, S0, S1).astype(jnp.float32)     # (B, 8, 8) NCW
    B = x.shape[0]

    # 36 scalars per row: channels 0,2,3,7 (full), x[:,1,-1], x[:,4:7,-1]; +1 ones col
    conv_in = x[:, jnp.array(CONV_SPLITS), :].reshape(B, 4 * S1)        # (B, 32)
    x_small = jnp.concatenate([x[:, 1:2, -1], x[:, 4:7, -1]], axis=1)   # (B, 4)
    ones = jnp.ones((B, 1), jnp.float32)
    x_all = jnp.concatenate([conv_in, x_small, ones], axis=1).astype(compute_dtype)

    wh, wo, bo = _expand_weights(params, compute_dtype)

    # Balanced batch tiling: >=2 tiles whenever B > 8 (keeps both v7x TCs busy),
    # tiles rounded to 8 sublanes, padding waste < 8 rows per tile.
    num_tiles = max(pl.cdiv(B, batch_block), 2 if B > 8 else 1)
    bb = _round_up(pl.cdiv(B, num_tiles), 8)
    bp = bb * num_tiles
    if bp != B:
        x_all = jnp.pad(x_all, ((0, bp - B), (0, 0)))

    itemsize = jnp.dtype(compute_dtype).itemsize
    flops = 2 * bp * X_AUG * MERGE_DIM + 2 * bp * MERGE_DIM * OUT_PAD
    bytes_accessed = (bp * X_AUG * itemsize
                      + X_AUG * MERGE_DIM * itemsize
                      + MERGE_DIM * OUT_PAD * itemsize + OUT_PAD * 4
                      + bp * OUT_PAD * 4)

    out = pl.pallas_call(
        actor_fused_kernel,
        out_shape=jax.ShapeDtypeStruct((bp, OUT_PAD), jnp.float32),
        grid=(num_tiles,),
        in_specs=[
            pl.BlockSpec((bb, X_AUG), lambda i: (i, 0)),
            # constant operands: single-buffer (index_map never changes)
            pl.BlockSpec((X_AUG, MERGE_DIM), lambda i: (0, 0),
                         pipeline_mode=pl.Buffered(1)),
            pl.BlockSpec((MERGE_DIM, OUT_PAD), lambda i: (0, 0),
                         pipeline_mode=pl.Buffered(1)),
            pl.BlockSpec((1, OUT_PAD), lambda i: (0, 0),
                         pipeline_mode=pl.Buffered(1)),
        ],
        out_specs=pl.BlockSpec((bb, OUT_PAD), lambda i: (i, 0)),
        compiler_params=pltpu.CompilerParams(
            dimension_semantics=("parallel",),
            vmem_limit_bytes=64 * 1024 * 1024),
        cost_estimate=pl.CostEstimate(
            flops=flops, transcendentals=0, bytes_accessed=bytes_accessed),
    )(x_all, wh, wo, bo)

    return out[:B, :ADIM]


# ----------------------------------------------------------------------------
# Pure-JAX reference (mirrors the PyTorch forward exactly, full f32 precision)
# ----------------------------------------------------------------------------
def actor_forward_ref(inputs, params):
    conv1_w, conv1_b, fc1_w, fc1_b, conv2_w, conv2_b, out_w, out_b = params
    x = inputs.reshape(-1, S0, S1).astype(jnp.float32)
    B = x.shape[0]
    hi = jax.lax.Precision.HIGHEST

    def conv1_branch(v):                                     # v: (B, S1)
        p = jnp.stack([v[:, l:l + K1] for l in range(CONV_OUT)], axis=1)  # (B,5,4)
        out = jnp.einsum('blk,ck->bcl', p, conv1_w.reshape(MID, K1), precision=hi) \
            + conv1_b[None, :, None]                         # (B, 128, 5)
        return jax.nn.relu(out).reshape(B, -1)               # channel-major flatten

    s0 = conv1_branch(x[:, 0, :])
    s1 = jax.nn.relu(jnp.dot(x[:, 1, -1:], fc1_w.T, precision=hi) + fc1_b)
    s2 = conv1_branch(x[:, 2, :])
    s3 = conv1_branch(x[:, 3, :])
    s4 = jax.nn.relu(jnp.dot(x[:, 4:7, -1], conv2_w.reshape(MID, 3).T,
                             precision=hi) + conv2_b)
    s5 = conv1_branch(x[:, 7, :])
    merge = jnp.concatenate([s0, s1, s2, s3, s4, s5], axis=1)
    return jax.nn.relu(jnp.dot(merge, out_w.T, precision=hi) + out_b)


# ----------------------------------------------------------------------------
def make_params(key):
    ks = jax.random.split(key, 8)
    scale = 0.1
    conv1_w = scale * jax.random.normal(ks[0], (MID, 1, K1), jnp.float32)
    conv1_b = scale * jax.random.normal(ks[1], (MID,), jnp.float32)
    fc1_w = scale * jax.random.normal(ks[2], (MID, 1), jnp.float32)
    fc1_b = scale * jax.random.normal(ks[3], (MID,), jnp.float32)
    conv2_w = scale * jax.random.normal(ks[4], (MID, 3, 1), jnp.float32)
    conv2_b = scale * jax.random.normal(ks[5], (MID,), jnp.float32)
    out_w = scale * jax.random.normal(ks[6], (ADIM, MERGE_DIM), jnp.float32)
    out_b = scale * jax.random.normal(ks[7], (ADIM,), jnp.float32)
    return (conv1_w, conv1_b, fc1_w, fc1_b, conv2_w, conv2_b, out_w, out_b)


if __name__ == "__main__":
    key = jax.random.PRNGKey(0)
    pkey, xkey = jax.random.split(key)
    params = make_params(pkey)

    # check 1: f32 compute path (structural exactness of the weight fold)
    B = 2
    inputs = jax.random.normal(xkey, (B, S0, S1), jnp.float32)   # (2, 8, 8)
    ref = jax.block_until_ready(actor_forward_ref(inputs, params))

    fwd_f32 = jax.jit(lambda x: actor_forward(x, params, compute_dtype=jnp.float32))
    out_f32 = jax.block_until_ready(fwd_f32(inputs))
    assert out_f32.shape == (B, ADIM), out_f32.shape
    assert jnp.allclose(out_f32, ref, rtol=2e-3, atol=2e-3), (out_f32, ref)

    # check 2: default bf16 compute path (looser tolerance due to rounding)
    fwd_bf16 = jax.jit(lambda x: actor_forward(x, params))
    out_bf16 = jax.block_until_ready(fwd_bf16(inputs))
    assert out_bf16.shape == (B, ADIM)
    assert jnp.allclose(out_bf16, ref, rtol=5e-2, atol=5e-2), (out_bf16, ref)

    # check 3: batch not a multiple of 8 and > 8 (padding + >=2 grid tiles path)
    B2 = 9
    inputs2 = jax.random.normal(jax.random.PRNGKey(3), (B2, S0, S1), jnp.float32)
    out2 = jax.block_until_ready(jax.jit(lambda x: actor_forward(x, params))(inputs2))
    ref2 = actor_forward_ref(inputs2, params)
    assert out2.shape == (B2, ADIM)
    assert jnp.allclose(out2, ref2, rtol=5e-2, atol=5e-2)

    print("KERNEL_OK")
</pallas_src>

<mosaic_0001>
module attributes {stable_mosaic.version = 11 : i64} {
  func.func @actor_fused_kernel(%arg0: i32, %arg1: memref<8x37xf32, #tpu.memory_space<vmem>>, %arg2: memref<37x2816xf32, #tpu.memory_space<vmem>>, %arg3: memref<2816x128xf32, #tpu.memory_space<vmem>>, %arg4: memref<1x128xf32, #tpu.memory_space<vmem>>, %arg5: memref<8x128xf32, #tpu.memory_space<vmem>>) attributes {dimension_semantics = [#tpu.dimension_semantics<parallel>], iteration_bounds = array<i64: 1>, scalar_prefetch = 0 : i64, scratch_operands = 0 : i64, tpu.core_type = #tpu.core_type<tc>, window_params = [{transform_indices = @transform_0, window_bounds = array<i64: 8, 37>}, {pipeline_mode = #tpu.pipeline_mode<synchronous>, transform_indices = @transform_1, window_bounds = array<i64: 37, 2816>}, {pipeline_mode = #tpu.pipeline_mode<synchronous>, transform_indices = @transform_2, window_bounds = array<i64: 2816, 128>}, {pipeline_mode = #tpu.pipeline_mode<synchronous>, transform_indices = @transform_3, window_bounds = array<i64: 1, 128>}, {transform_indices = @transform_4, window_bounds = array<i64: 8, 128>}]} {
    %c0 = arith.constant 0 : index
    %c0_0 = arith.constant 0 : index
    %0 = vector.load %arg1[%c0, %c0_0] : memref<8x37xf32, #tpu.memory_space<vmem>>, vector<8x37xf32>
    %c0_1 = arith.constant 0 : index
    %c0_2 = arith.constant 0 : index
    %1 = vector.load %arg2[%c0_1, %c0_2] : memref<37x2816xf32, #tpu.memory_space<vmem>>, vector<37x2816xf32>
    %cst = arith.constant dense<0.000000e+00> : vector<8x2816xf32>
    %2 = tpu.matmul %0, %1, %cst {dimension_numbers = #tpu.dot_dimension_numbers<[1], [0], [0], [1], [0, 0, 1, 1], [], []>} : vector<8x37xf32>, vector<37x2816xf32>, vector<8x2816xf32> -> vector<8x2816xf32>
    %cst_3 = arith.constant 0.000000e+00 : f32
    %3 = vector.broadcast %cst_3 : f32 to vector<8x2816xf32>
    %4 = arith.maximumf %2, %3 : vector<8x2816xf32>
    %c0_4 = arith.constant 0 : index
    %c0_5 = arith.constant 0 : index
    %5 = vector.load %arg3[%c0_4, %c0_5] : memref<2816x128xf32, #tpu.memory_space<vmem>>, vector<2816x128xf32>
    %cst_6 = arith.constant dense<0.000000e+00> : vector<8x128xf32>
    %6 = tpu.matmul %4, %5, %cst_6 {dimension_numbers = #tpu.dot_dimension_numbers<[1], [0], [0], [1], [0, 0, 1, 1], [], []>} : vector<8x2816xf32>, vector<2816x128xf32>, vector<8x128xf32> -> vector<8x128xf32>
    %c0_7 = arith.constant 0 : index
    %c0_8 = arith.constant 0 : index
    %7 = vector.load %arg4[%c0_7, %c0_8] : memref<1x128xf32, #tpu.memory_space<vmem>>, vector<1x128xf32>
    %8 = vector.broadcast %7 : vector<1x128xf32> to vector<8x128xf32>
    %9 = arith.addf %6, %8 : vector<8x128xf32>
    %cst_9 = arith.constant 0.000000e+00 : f32
    %10 = vector.broadcast %cst_9 : f32 to vector<8x128xf32>
    %11 = arith.maximumf %9, %10 : vector<8x128xf32>
    %c0_10 = arith.constant 0 : index
    %c0_11 = arith.constant 0 : index
    %12 = vector.load %arg5[%c0_10, %c0_11] : memref<8x128xf32, #tpu.memory_space<vmem>>, vector<8x128xf32>
    tpu.vector_store %arg5[%c0_10, %c0_11], %11 {strides = array<i32>} : memref<8x128xf32, #tpu.memory_space<vmem>>, vector<8x128xf32>,
    return
  }
  func.func @transform_0(%arg0: i32) -> (i32, i32) {
    %c0_i32 = arith.constant 0 : i32
    %c0_i32_0 = arith.constant 0 : i32
    return %arg0, %c0_i32 : i32, i32
  }
  func.func @transform_1(%arg0: i32) -> (i32, i32) {
    %c0_i32 = arith.constant 0 : i32
    %c0_i32_0 = arith.constant 0 : i32
    %c0_i32_1 = arith.constant 0 : i32
    return %c0_i32, %c0_i32_0 : i32, i32
  }
  func.func @transform_2(%arg0: i32) -> (i32, i32) {
    %c0_i32 = arith.constant 0 : i32
    %c0_i32_0 = arith.constant 0 : i32
    %c0_i32_1 = arith.constant 0 : i32
    return %c0_i32, %c0_i32_0 : i32, i32
  }
  func.func @transform_3(%arg0: i32) -> (i32, i32) {
    %c0_i32 = arith.constant 0 : i32
    %c0_i32_0 = arith.constant 0 : i32
    %c0_i32_1 = arith.constant 0 : i32
    return %c0_i32, %c0_i32_0 : i32, i32
  }
  func.func @transform_4(%arg0: i32) -> (i32, i32) {
    %c0_i32 = arith.constant 0 : i32
    %c0_i32_0 = arith.constant 0 : i32
    return %arg0, %c0_i32 : i32, i32
  }
}

</mosaic_0001>

<bundles_post_ra>
// kernel: _lambda_.1
= control target key start
LH: loop header
LB: loop body
LE: loop exit
PB: predicated region body
PF: predicated region fallthrough
CT: control target
= control target key end

     0   :  { %vm132_vm0 = vcmask 1044480   ;;  %vm128_vm1 = vcmask 302080   ;;  %s2996_s1 = inlined_call_operand.vmem [shape: f32[37,2816], index: 1, kind: input, shape index: {}]   ;;  %s2997_s0 = inlined_call_operand.vmem [shape: f32[8,37], index: 0, kind: input, shape index: {}]   ;;  %s2998_s2 = inlined_call_operand.vmem [shape: f32[2816,128], index: 2, kind: input, shape index: {}]   ;;  %s2999_s3 = inlined_call_operand.vmem [shape: f32[1,128], index: 3, kind: input, shape index: {}]   ;;  %s3000_s4 = inlined_call_operand.vmem [shape: f32[8,128], index: 4, kind: output, shape index: {}]  }
   0x1   :  { %v106_v0 = vld [vmem:[%s2996_s1 + $0x2c0] sm:$0x1f]  ;;  %v84_v1 = vld [vmem:[%s2996_s1 + $0x210] sm:$0xff]  ;;  %v107_v2 = vld [vmem:[%s2996_s1 + $0x2c8] sm:$0x1f] }
   0x2   :  { %1463 = vmatpush.msk.msra.mxu0 %vm132_vm0, %v106_v0  ;;  %1465 = vmatpush.msk.msra.mxu1 %vm132_vm0, %v107_v2  ;;  %v85_v3 = vld [vmem:[%s2996_s1 + $0x218] sm:$0xff]  ;;  %v62_v4 = vld [vmem:[%s2996_s1 + $0x160] sm:$0xff]  ;;  %v63_v5 = vld [vmem:[%s2996_s1 + $0x168] sm:$0xff] }
   0x3   :  { %v40_v6 = vld [vmem:[%s2996_s1 + $0xb0] sm:$0xff]  ;;  %v41_v7 = vld [vmem:[%s2996_s1 + $0xb8] sm:$0xff]  ;;  %v18_v8 = vld [vmem:[%s2996_s1] sm:$0xff] }
   0x4   :  { %211 = vmatpush.msra.mxu0 %v84_v1  ;;  %231 = vmatpush.msra.mxu1 %v85_v3  ;;  %v19_v9 = vld [vmem:[%s2996_s1 + $0x8] sm:$0xff]  ;;  %v1568_v10 = vld [vmem:[%s2997_s0] sm:$0xff]  ;;  %v108_v11 = vld [vmem:[%s2996_s1 + $0x2d0] sm:$0x1f] }
   0x5   :  { %v109_v12 = vld [vmem:[%s2996_s1 + $0x2d8] sm:$0x1f]  ;;  %v112_v13 = vld [vmem:[%s2996_s1 + $0x2f0] sm:$0x1f]  ;;  %v86_v14 = vld [vmem:[%s2996_s1 + $0x220] sm:$0xff] }
   0x6   :  { %212 = vmatpush.msra.mxu0 %v62_v4  ;;  %232 = vmatpush.msra.mxu1 %v63_v5  ;;  %v87_v15 = vld [vmem:[%s2996_s1 + $0x228] sm:$0xff]  ;;  %v113_v16 = vld [vmem:[%s2996_s1 + $0x2f8] sm:$0x1f]  ;;  %v90_v17 = vld [vmem:[%s2996_s1 + $0x240] sm:$0xff] }
   0x7   :  { %v91_v18 = vld [vmem:[%s2996_s1 + $0x248] sm:$0xff]  ;;  %v64_v19 = vld [vmem:[%s2996_s1 + $0x170] sm:$0xff]  ;;  %v65_v20 = vld [vmem:[%s2996_s1 + $0x178] sm:$0xff]  ;;  %1475 = vmatpush.msk.msra.mxu2 %vm132_vm0, %v112_v13  ;;  %1477 = vmatpush.msk.msra.mxu3 %vm132_vm0, %v113_v16 }
   0x8   :  { %213 = vmatpush.msra.mxu0 %v40_v6  ;;  %233 = vmatpush.msra.mxu1 %v41_v7  ;;  %v68_v21 = vld [vmem:[%s2996_s1 + $0x190] sm:$0xff]  ;;  %v69_v22 = vld [vmem:[%s2996_s1 + $0x198] sm:$0xff]  ;;  %v42_v23 = vld [vmem:[%s2996_s1 + $0xc0] sm:$0xff] }
   0x9   :  { %v43_v24 = vld [vmem:[%s2996_s1 + $0xc8] sm:$0xff]  ;;  %331 = vmatpush.msra.mxu2 %v90_v17  ;;  %351 = vmatpush.msra.mxu3 %v91_v18  ;;  %v46_v25 = vld [vmem:[%s2996_s1 + $0xe0] sm:$0xff]  ;;  %v20_v27 = vld [vmem:[%s2996_s1 + $0x10] sm:$0xff] }
   0xa   :  { %214 = vmatpush.msra.mxu0 %v18_v8  ;;  %234 = vmatpush.msra.mxu1 %v19_v9  ;;  %v47_v26 = vld [vmem:[%s2996_s1 + $0xe8] sm:$0xff]  ;;  %v21_v28 = vld [vmem:[%s2996_s1 + $0x18] sm:$0xff]  ;;  %v110_v29 = vld [vmem:[%s2996_s1 + $0x2e0] sm:$0x1f] }
   0xb   :  { %1464 = vmatmul.msk.f32.vlgmr.msra.gmra.mxu0 %vm128_vm1, %v1568_v10  ;;  %1466 = vmatmul.msk.f32.vlgmr.msra.gmra.mxu1 %vm128_vm1, %v1568_v10  ;;  %v111_v30 = vld [vmem:[%s2996_s1 + $0x2e8] sm:$0x1f]  ;;  %v88_v31 = vld [vmem:[%s2996_s1 + $0x230] sm:$0xff]  ;;  %v89_v32 = vld [vmem:[%s2996_s1 + $0x238] sm:$0xff] }
   0xc   :  { %1467 = vmatpush.msk.msrb.mxu0 %vm132_vm0, %v108_v11  ;;  %1469 = vmatpush.msk.msrb.mxu1 %vm132_vm0, %v109_v12  ;;  %v24_v33 = vld [vmem:[%s2996_s1 + $0x30] sm:$0xff]  ;;  %v25_v34 = vld [vmem:[%s2996_s1 + $0x38] sm:$0xff]  ;;  %v66_v35 = vld [vmem:[%s2996_s1 + $0x180] sm:$0xff] }
   0xd   :  { %332 = vmatpush.msra.mxu2 %v68_v21  ;;  %352 = vmatpush.msra.mxu3 %v69_v22  ;;  %v67_v36 = vld [vmem:[%s2996_s1 + $0x188] sm:$0xff]  ;;  %v44_v37 = vld [vmem:[%s2996_s1 + $0xd0] sm:$0xff]  ;;  %v45_v38 = vld [vmem:[%s2996_s1 + $0xd8] sm:$0xff] }
   0xe   :  { %251 = vmatpush.msrb.mxu0 %v86_v14  ;;  %271 = vmatpush.msrb.mxu1 %v87_v15  ;;  %v116_v39 = vld [vmem:[%s2996_s1 + $0x310] sm:$0x1f]  ;;  %v117_v40 = vld [vmem:[%s2996_s1 + $0x318] sm:$0x1f]  ;;  %v22_v41 = vld [vmem:[%s2996_s1 + $0x20] sm:$0xff] }
   0xf   :  { %333 = vmatpush.msra.mxu2 %v46_v25  ;;  %353 = vmatpush.msra.mxu3 %v47_v26  ;;  %v23_v42 = vld [vmem:[%s2996_s1 + $0x28] sm:$0xff]  ;;  %v114_v43 = vld [vmem:[%s2996_s1 + $0x300] sm:$0x1f]  ;;  %v92_v47 = vld [vmem:[%s2996_s1 + $0x250] sm:$0xff] }
  0x10   :  { %252 = vmatpush.msrb.mxu0 %v64_v19  ;;  %272 = vmatpush.msrb.mxu1 %v65_v20  ;;  %v115_v44 = vld [vmem:[%s2996_s1 + $0x308] sm:$0x1f]  ;;  %v94_v45 = vld [vmem:[%s2996_s1 + $0x260] sm:$0xff]  ;;  %v93_v48 = vld [vmem:[%s2996_s1 + $0x258] sm:$0xff] }
  0x11   :  { %334 = vmatpush.msra.mxu2 %v24_v33  ;;  %354 = vmatpush.msra.mxu3 %v25_v34  ;;  %v95_v46 = vld [vmem:[%s2996_s1 + $0x268] sm:$0xff]  ;;  %v72_v49 = vld [vmem:[%s2996_s1 + $0x1b0] sm:$0xff]  ;;  %v73_v50 = vld [vmem:[%s2996_s1 + $0x1b8] sm:$0xff] }
  0x12   :  { %253 = vmatpush.msrb.mxu0 %v42_v23  ;;  %273 = vmatpush.msrb.mxu1 %v43_v24  ;;  %v70_v51 = vld [vmem:[%s2996_s1 + $0x1a0] sm:$0xff]  ;;  %v71_v52 = vld [vmem:[%s2996_s1 + $0x1a8] sm:$0xff]  ;;  %v48_v55 = vld [vmem:[%s2996_s1 + $0xf0] sm:$0xff] }
  0x13   :  { %1476 = vmatmul.msk.f32.vlgmr.msra.gmra.mxu2 %vm128_vm1, %v1568_v10  ;;  %1478 = vmatmul.msk.f32.vlgmr.msra.gmra.mxu3 %vm128_vm1, %v1568_v10  ;;  %v50_v53 = vld [vmem:[%s2996_s1 + $0x100] sm:$0xff]  ;;  %v51_v54 = vld [vmem:[%s2996_s1 + $0x108] sm:$0xff]  ;;  %v49_v56 = vld [vmem:[%s2996_s1 + $0xf8] sm:$0xff] }
  0x14   :  { %254 = vmatpush.msrb.mxu0 %v20_v27  ;;  %274 = vmatpush.msrb.mxu1 %v21_v28  ;;  %v28_v57 = vld [vmem:[%s2996_s1 + $0x50] sm:$0xff]  ;;  %v29_v58 = vld [vmem:[%s2996_s1 + $0x58] sm:$0xff]  ;;  %v26_v59 = vld [vmem:[%s2996_s1 + $0x40] sm:$0xff] }
  0x15   :  { %1468 = vmatmul.msk.f32.vlgmr.msrb.gmra.mxu0 %vm128_vm1, %v1568_v10  ;;  %1470 = vmatmul.msk.f32.vlgmr.msrb.gmra.mxu1 %vm128_vm1, %v1568_v10  ;;  %v27_v60 = vld [vmem:[%s2996_s1 + $0x48] sm:$0xff]  ;;  %v120_v61 = vld [vmem:[%s2996_s1 + $0x330] sm:$0x1f]  ;;  %v118_v62 = vld [vmem:[%s2996_s1 + $0x320] sm:$0x1f] }
  0x16   :  { %1471 = vmatpush.msk.msra.mxu0 %vm132_vm0, %v110_v29  ;;  %1473 = vmatpush.msk.msra.mxu1 %vm132_vm0, %v111_v30  ;;  %v121_v63 = vld [vmem:[%s2996_s1 + $0x338] sm:$0x1f]  ;;  %v119_v0 = vld [vmem:[%s2996_s1 + $0x328] sm:$0x1f]  ;;  %v98_v1 = vld [vmem:[%s2996_s1 + $0x280] sm:$0xff] }
  0x17   :  { %1483 = vmatpush.msk.msrb.mxu2 %vm132_vm0, %v116_v39  ;;  %1485 = vmatpush.msk.msrb.mxu3 %vm132_vm0, %v117_v40  ;;  %v96_v2 = vld [vmem:[%s2996_s1 + $0x270] sm:$0xff]  ;;  %v99_v3 = vld [vmem:[%s2996_s1 + $0x288] sm:$0xff]  ;;  %v97_v4 = vld [vmem:[%s2996_s1 + $0x278] sm:$0xff] }
  0x18   :  { %291 = vmatpush.msra.mxu0 %v88_v31  ;;  %311 = vmatpush.msra.mxu1 %v89_v32  ;;  %v76_v5 = vld [vmem:[%s2996_s1 + $0x1d0] sm:$0xff]  ;;  %v74_v6 = vld [vmem:[%s2996_s1 + $0x1c0] sm:$0xff]  ;;  %v77_v7 = vld [vmem:[%s2996_s1 + $0x1d8] sm:$0xff] }
  0x19   :  { %411 = vmatpush.msrb.mxu2 %v94_v45  ;;  %431 = vmatpush.msrb.mxu3 %v95_v46  ;;  %v75_v8 = vld [vmem:[%s2996_s1 + $0x1c8] sm:$0xff]  ;;  %v54_v9 = vld [vmem:[%s2996_s1 + $0x120] sm:$0xff]  ;;  %v52_v11 = vld [vmem:[%s2996_s1 + $0x110] sm:$0xff] }
  0x1a   :  { %292 = vmatpush.msra.mxu0 %v66_v35  ;;  %312 = vmatpush.msra.mxu1 %v67_v36  ;;  %v55_v12 = vld [vmem:[%s2996_s1 + $0x128] sm:$0xff]  ;;  %v53_v13 = vld [vmem:[%s2996_s1 + $0x118] sm:$0xff]  ;;  %v32_v14 = vld [vmem:[%s2996_s1 + $0x70] sm:$0xff] }
  0x1b   :  { %412 = vmatpush.msrb.mxu2 %v72_v49  ;;  %432 = vmatpush.msrb.mxu3 %v73_v50  ;;  %v30_v15 = vld [vmem:[%s2996_s1 + $0x60] sm:$0xff]  ;;  %v124_v16 = vld [vmem:[%s2996_s1 + $0x350] sm:$0x1f]  ;;  %v33_v17 = vld [vmem:[%s2996_s1 + $0x78] sm:$0xff] }
  0x1c   :  { %293 = vmatpush.msra.mxu0 %v44_v37  ;;  %313 = vmatpush.msra.mxu1 %v45_v38  ;;  %v122_v18 = vld [vmem:[%s2996_s1 + $0x340] sm:$0x1f]  ;;  %v31_v19 = vld [vmem:[%s2996_s1 + $0x68] sm:$0xff]  ;;  %v125_v21 = vld [vmem:[%s2996_s1 + $0x358] sm:$0x1f] }
  0x1d   :  { %413 = vmatpush.msrb.mxu2 %v50_v53  ;;  %433 = vmatpush.msrb.mxu3 %v51_v54  ;;  %v102_v20 = vld [vmem:[%s2996_s1 + $0x2a0] sm:$0xff]  ;;  %v100_v22 = vld [vmem:[%s2996_s1 + $0x290] sm:$0xff]  ;;  %v123_v23 = vld [vmem:[%s2996_s1 + $0x348] sm:$0x1f] }
  0x1e   :  { %294 = vmatpush.msra.mxu0 %v22_v41  ;;  %314 = vmatpush.msra.mxu1 %v23_v42  ;;  %v80_v24 = vld [vmem:[%s2996_s1 + $0x1f0] sm:$0xff]  ;;  %v103_v25 = vld [vmem:[%s2996_s1 + $0x2a8] sm:$0xff]  ;;  %v101_v26 = vld [vmem:[%s2996_s1 + $0x298] sm:$0xff] }
  0x1f   :  { %1472 = vmatmul.msk.f32.vlgmr.msra.gmra.mxu0 %vm128_vm1, %v1568_v10  ;;  %1474 = vmatmul.msk.f32.vlgmr.msra.gmra.mxu1 %vm128_vm1, %v1568_v10  ;;  %v78_v27 = vld [vmem:[%s2996_s1 + $0x1e0] sm:$0xff]  ;;  %v81_v29 = vld [vmem:[%s2996_s1 + $0x1f8] sm:$0xff]  ;;  %v56_v30 = vld [vmem:[%s2996_s1 + $0x130] sm:$0xff] }
  0x20   :  { %1479 = vmatpush.msk.msrb.mxu0 %vm132_vm0, %v114_v43  ;;  %1481 = vmatpush.msk.msrb.mxu1 %vm132_vm0, %v115_v44  ;;  %v58_v28 = vld [vmem:[%s2996_s1 + $0x140] sm:$0xff]  ;;  %v79_v31 = vld [vmem:[%s2996_s1 + $0x1e8] sm:$0xff]  ;;  %v36_v32 = vld [vmem:[%s2996_s1 + $0x90] sm:$0xff] }
  0x21   :  { %414 = vmatpush.msrb.mxu2 %v28_v57  ;;  %434 = vmatpush.msrb.mxu3 %v29_v58  ;;  %v59_v33 = vld [vmem:[%s2996_s1 + $0x148] sm:$0xff]  ;;  %v34_v34 = vld [vmem:[%s2996_s1 + $0x80] sm:$0xff]  ;;  %v57_v35 = vld [vmem:[%s2996_s1 + $0x138] sm:$0xff] }
  0x22   :  { %371 = vmatpush.msrb.mxu0 %v92_v47  ;;  %391 = vmatpush.msrb.mxu1 %v93_v48  ;;  %v676_v36 = vld [vmem:[%s2998_s2 + $0x78] sm:$0xff]  ;;  %v126_v38 = vld [vmem:[%s2996_s1 + $0x360] sm:$0x1f]  ;;  %v35_v39 = vld [vmem:[%s2996_s1 + $0x88] sm:$0xff] }
  0x23   :  { %1484 = vmatmul.msk.f32.vlgmr.msrb.gmra.mxu2 %vm128_vm1, %v1568_v10  ;;  %1486 = vmatmul.msk.f32.vlgmr.msrb.gmra.mxu3 %vm128_vm1, %v1568_v10  ;;  %v37_v37 = vld [vmem:[%s2996_s1 + $0x98] sm:$0xff]  ;;  %v675_v40 = vld [vmem:[%s2998_s2 + $0x70] sm:$0xff]  ;;  %v127_v43 = vld [vmem:[%s2996_s1 + $0x368] sm:$0x1f] }
  0x24   :  { %372 = vmatpush.msrb.mxu0 %v70_v51  ;;  %392 = vmatpush.msrb.mxu1 %v71_v52  ;;  %v692_v41 = vld [vmem:[%s2998_s2 + $0xf8] sm:$0xff]  ;;  %v104_v42 = vld [vmem:[%s2996_s1 + $0x2b0] sm:$0xff]  ;;  %v674_v44 = vld [vmem:[%s2998_s2 + $0x68] sm:$0xff] }
  0x25   :  { %1491 = vmatpush.msk.msra.mxu2 %vm132_vm0, %v120_v61  ;;  %1493 = vmatpush.msk.msra.mxu3 %vm132_vm0, %v121_v63  ;;  %v691_v45 = vld [vmem:[%s2998_s2 + $0xf0] sm:$0xff]  ;;  %v82_v46 = vld [vmem:[%s2996_s1 + $0x200] sm:$0xff]  ;;  %v105_v47 = vld [vmem:[%s2996_s1 + $0x2b8] sm:$0xff] }
  0x26   :  { %373 = vmatpush.msrb.mxu0 %v48_v55  ;;  %393 = vmatpush.msrb.mxu1 %v49_v56  ;;  %v673_v48 = vld [vmem:[%s2998_s2 + $0x60] sm:$0xff]  ;;  %v690_v49 = vld [vmem:[%s2998_s2 + $0xe8] sm:$0xff]  ;;  %v60_v50 = vld [vmem:[%s2996_s1 + $0x150] sm:$0xff] }
  0x27   :  { %491 = vmatpush.msra.mxu2 %v98_v1  ;;  %511 = vmatpush.msra.mxu3 %v99_v3  ;;  %v83_v51 = vld [vmem:[%s2996_s1 + $0x208] sm:$0xff]  ;;  %v672_v52 = vld [vmem:[%s2998_s2 + $0x58] sm:$0xff]  ;;  %v689_v53 = vld [vmem:[%s2998_s2 + $0xe0] sm:$0xff] }
  0x28   :  { %374 = vmatpush.msrb.mxu0 %v26_v59  ;;  %394 = vmatpush.msrb.mxu1 %v27_v60  ;;  %v38_v54 = vld [vmem:[%s2996_s1 + $0xa0] sm:$0xff]  ;;  %v61_v55 = vld [vmem:[%s2996_s1 + $0x158] sm:$0xff]  ;;  %v671_v56 = vld [vmem:[%s2998_s2 + $0x50] sm:$0xff] }
  0x29   :  { %1480 = vmatmul.msk.f32.vlgmr.msrb.gmra.mxu0 %vm128_vm1, %v1568_v10  ;;  %1482 = vmatmul.msk.f32.vlgmr.msrb.gmra.mxu1 %vm128_vm1, %v1568_v10  ;;  %v688_v57 = vld [vmem:[%s2998_s2 + $0xd8] sm:$0xff]  ;;  %v39_v59 = vld [vmem:[%s2996_s1 + $0xa8] sm:$0xff]  ;;  %v687_v61 = vld [vmem:[%s2998_s2 + $0xd0] sm:$0xff] }
  0x2a   :  { %1487 = vmatpush.msk.msra.mxu0 %vm132_vm0, %v118_v62  ;;  %1489 = vmatpush.msk.msra.mxu1 %vm132_vm0, %v119_v0  ;;  %v708_v58 = vld [vmem:[%s2998_s2 + $0x178] sm:$0xff]  ;;  %v670_v60 = vld [vmem:[%s2998_s2 + $0x48] sm:$0xff]  ;;  %v707_v62 = vld [vmem:[%s2998_s2 + $0x170] sm:$0xff] }
  0x2b   :  { %492 = vmatpush.msra.mxu2 %v76_v5  ;;  %512 = vmatpush.msra.mxu3 %v77_v7  ;;  %v724_v63 = vld [vmem:[%s2998_s2 + $0x1f8] sm:$0xff]  ;;  %v669_v0 = vld [vmem:[%s2998_s2 + $0x40] sm:$0xff]  ;;  %v686_v1 = vld [vmem:[%s2998_s2 + $0xc8] sm:$0xff] }
  0x2c   :  { %451 = vmatpush.msra.mxu0 %v96_v2  ;;  %471 = vmatpush.msra.mxu1 %v97_v4  ;;  %v706_v2 = vld [vmem:[%s2998_s2 + $0x168] sm:$0xff]  ;;  %v723_v3 = vld [vmem:[%s2998_s2 + $0x1f0] sm:$0xff]  ;;  %v668_v4 = vld [vmem:[%s2998_s2 + $0x38] sm:$0xff] }
  0x2d   :  { %493 = vmatpush.msra.mxu2 %v54_v9  ;;  %513 = vmatpush.msra.mxu3 %v55_v12  ;;  %v685_v5 = vld [vmem:[%s2998_s2 + $0xc0] sm:$0xff]  ;;  %v722_v7 = vld [vmem:[%s2998_s2 + $0x1e8] sm:$0xff]  ;;  %v684_v9 = vld [vmem:[%s2998_s2 + $0xb8] sm:$0xff] }
  0x2e   :  { %452 = vmatpush.msra.mxu0 %v74_v6  ;;  %472 = vmatpush.msra.mxu1 %v75_v8  ;;  %v705_v6 = vld [vmem:[%s2998_s2 + $0x160] sm:$0xff]  ;;  %v667_v8 = vld [vmem:[%s2998_s2 + $0x30] sm:$0xff] }
  0x2f   :  { %494 = vmatpush.msra.mxu2 %v32_v14  ;;  %514 = vmatpush.msra.mxu3 %v33_v17  ;;  %v721_v12 = vld [vmem:[%s2998_s2 + $0x1e0] sm:$0xff]  ;;  %v683_v14 = vld [vmem:[%s2998_s2 + $0xb0] sm:$0xff] }
  0x30   :  { %453 = vmatpush.msra.mxu0 %v52_v11  ;;  %473 = vmatpush.msra.mxu1 %v53_v13  ;;  %v704_v11 = vld [vmem:[%s2998_s2 + $0x158] sm:$0xff]  ;;  %v666_v13 = vld [vmem:[%s2998_s2 + $0x28] sm:$0xff]  ;;  %v665_v17 = vld [vmem:[%s2998_s2 + $0x20] sm:$0xff] }
  0x31   :  { %1499 = vmatpush.msk.msrb.mxu2 %vm132_vm0, %v124_v16  ;;  %1501 = vmatpush.msk.msrb.mxu3 %vm132_vm0, %v125_v21  ;;  %v720_v16 = vld [vmem:[%s2998_s2 + $0x1d8] sm:$0xff] }
  0x32   :  { %454 = vmatpush.msra.mxu0 %v30_v15  ;;  %474 = vmatpush.msra.mxu1 %v31_v19  ;;  %v703_v15 = vld [vmem:[%s2998_s2 + $0x150] sm:$0xff]  ;;  %v702_v19 = vld [vmem:[%s2998_s2 + $0x148] sm:$0xff]  ;;  %v664_v21 = vld [vmem:[%s2998_s2 + $0x18] sm:$0xff] }
  0x33   :  { %571 = vmatpush.msrb.mxu2 %v102_v20  ;;  %591 = vmatpush.msrb.mxu3 %v103_v25  ;;  %v719_v20 = vld [vmem:[%s2998_s2 + $0x1d0] sm:$0xff] }
  0x34   :  { %1495 = vmatpush.msk.msrb.mxu0 %vm132_vm0, %v122_v18  ;;  %1497 = vmatpush.msk.msrb.mxu1 %vm132_vm0, %v123_v23  ;;  %v682_v18 = vld [vmem:[%s2998_s2 + $0xa8] sm:$0xff]  ;;  %v701_v23 = vld [vmem:[%s2998_s2 + $0x140] sm:$0xff]  ;;  %v663_v25 = vld [vmem:[%s2998_s2 + $0x10] sm:$0xff] }
  0x35   :  { %572 = vmatpush.msrb.mxu2 %v80_v24  ;;  %1488 = vmatmul.msk.f32.vlgmr.msra.gmra.mxu0 %vm128_vm1, %v1568_v10  ;;  %v718_v24 = vld [vmem:[%s2998_s2 + $0x1c8] sm:$0xff] }
  0x36   :  { %531 = vmatpush.msrb.mxu0 %v100_v22  ;;  %551 = vmatpush.msrb.mxu1 %v101_v26  ;;  %v681_v22 = vld [vmem:[%s2998_s2 + $0xa0] sm:$0xff]  ;;  %v680_v26 = vld [vmem:[%s2998_s2 + $0x98] sm:$0xff] }
  0x37   :  { %573 = vmatpush.msrb.mxu2 %v58_v28  ;;  %592 = vmatpush.msrb.mxu3 %v81_v29  ;;  %v717_v28 = vld [vmem:[%s2998_s2 + $0x1c0] sm:$0xff]  ;;  %v662_v29 = vld [vmem:[%s2998_s2 + $0x8] sm:$0xff] }
  0x38   :  { %532 = vmatpush.msrb.mxu0 %v78_v27  ;;  %1490 = vmatmul.msk.f32.vlgmr.msra.gmra.mxu1 %vm128_vm1, %v1568_v10  ;;  %v700_v27 = vld [vmem:[%s2998_s2 + $0x138] sm:$0xff] }
  0x39   :  { %552 = vmatpush.msrb.mxu1 %v79_v31  ;;  %574 = vmatpush.msrb.mxu2 %v36_v32  ;;  %v699_v31 = vld [vmem:[%s2998_s2 + $0x130] sm:$0xff]  ;;  %v716_v32 = vld [vmem:[%s2998_s2 + $0x1b8] sm:$0xff] }
  0x3a   :  { %533 = vmatpush.msrb.mxu0 %v56_v30  ;;  %593 = vmatpush.msrb.mxu3 %v59_v33  ;;  %v679_v30 = vld [vmem:[%s2998_s2 + $0x90] sm:$0xff]  ;;  %v661_v33 = vld [vmem:[%s2998_s2] sm:$0xff] }
  0x3b   :  { %1492 = vmatmul.msk.f32.vlgmr.msra.gmra.mxu2 %vm128_vm1, %v1568_v10  ;;  %553 = vmatpush.msrb.mxu1 %v57_v35  ;;  %v698_v35 = vld [vmem:[%s2998_s2 + $0x128] sm:$0xff] }
  0x3c   :  { %534 = vmatpush.msrb.mxu0 %v34_v34  ;;  %1017 = vmatpush.msra.mxu2 %v676_v36  ;;  %v678_v34 = vld [vmem:[%s2998_s2 + $0x88] sm:$0xff]  ;;  %v715_v36 = vld [vmem:[%s2998_s2 + $0x1b0] sm:$0xff] }
  0x3d   :  { %594 = vmatpush.msrb.mxu3 %v37_v37  ;;  %554 = vmatpush.msrb.mxu1 %v35_v39  ;;  %v677_v37 = vld [vmem:[%s2998_s2 + $0x80] sm:$0xff] }
  0x3e   :  { %1503 = vmatpush.msk.msra.mxu0 %vm132_vm0, %v126_v38  ;;  %1494 = vmatmul.msk.f32.vlgmr.msra.gmra.mxu3 %vm128_vm1, %v1568_v10  ;;  %v740_v38 = vld [vmem:[%s2998_s2 + $0x278] sm:$0xff]  ;;  %v697_v39 = vld [vmem:[%s2998_s2 + $0x120] sm:$0xff] }
  0x3f   :  { %1018 = vmatpush.msra.mxu2 %v675_v40  ;;  %1037 = vmatpush.msra.mxu3 %v692_v41  ;;  %v714_v40 = vld [vmem:[%s2998_s2 + $0x1a8] sm:$0xff]  ;;  %v739_v41 = vld [vmem:[%s2998_s2 + $0x270] sm:$0xff] }
  0x40   :  { %611 = vmatpush.msra.mxu0 %v104_v42  ;;  %1505 = vmatpush.msk.msra.mxu1 %vm132_vm0, %v127_v43  ;;  %v756_v42 = vld [vmem:[%s2998_s2 + $0x2f8] sm:$0xff] }
  0x41   :  { %1019 = vmatpush.msra.mxu2 %v674_v44  ;;  %1038 = vmatpush.msra.mxu3 %v691_v45  ;;  %v696_v43 = vld [vmem:[%s2998_s2 + $0x118] sm:$0xff]  ;;  %v713_v44 = vld [vmem:[%s2998_s2 + $0x1a0] sm:$0xff]  ;;  %v738_v45 = vld [vmem:[%s2998_s2 + $0x268] sm:$0xff] }
  0x42   :  { %612 = vmatpush.msra.mxu0 %v82_v46  ;;  %631 = vmatpush.msra.mxu1 %v105_v47  ;;  %v755_v46 = vld [vmem:[%s2998_s2 + $0x2f0] sm:$0xff] }
  0x43   :  { %1020 = vmatpush.msra.mxu2 %v673_v48  ;;  %1039 = vmatpush.msra.mxu3 %v690_v49  ;;  %v695_v47 = vld [vmem:[%s2998_s2 + $0x110] sm:$0xff]  ;;  %v712_v48 = vld [vmem:[%s2998_s2 + $0x198] sm:$0xff]  ;;  %v737_v49 = vld [vmem:[%s2998_s2 + $0x260] sm:$0xff] }
  0x44   :  { %613 = vmatpush.msra.mxu0 %v60_v50  ;;  %632 = vmatpush.msra.mxu1 %v83_v51  ;;  %v754_v50 = vld [vmem:[%s2998_s2 + $0x2e8] sm:$0xff] }
  0x45   :  { %1021 = vmatpush.msra.mxu2 %v672_v52  ;;  %1040 = vmatpush.msra.mxu3 %v689_v53  ;;  %v694_v51 = vld [vmem:[%s2998_s2 + $0x108] sm:$0xff]  ;;  %v711_v52 = vld [vmem:[%s2998_s2 + $0x190] sm:$0xff]  ;;  %v736_v53 = vld [vmem:[%s2998_s2 + $0x258] sm:$0xff] }
  0x46   :  { %614 = vmatpush.msra.mxu0 %v38_v54  ;;  %633 = vmatpush.msra.mxu1 %v61_v55  ;;  %v753_v54 = vld [vmem:[%s2998_s2 + $0x2e0] sm:$0xff] }
  0x47   :  { %1496 = vmatmul.msk.f32.vlgmr.msrb.gmra.mxu0 %vm128_vm1, %v1568_v10  ;;  %1022 = vmatpush.msra.mxu2 %v671_v56  ;;  %v693_v55 = vld [vmem:[%s2998_s2 + $0x100] sm:$0xff]  ;;  %v710_v56 = vld [vmem:[%s2998_s2 + $0x188] sm:$0xff] }
  0x48   :  { %1041 = vmatpush.msra.mxu3 %v688_v57  ;;  %1057 = vmatpush.msrb.mxu0 %v708_v58  ;;  %v735_v57 = vld [vmem:[%s2998_s2 + $0x250] sm:$0xff]  ;;  %v752_v58 = vld [vmem:[%s2998_s2 + $0x2d8] sm:$0xff] }
  0x49   :  { %634 = vmatpush.msra.mxu1 %v39_v59  ;;  %1023 = vmatpush.msra.mxu2 %v670_v60  ;;  %v772_v59 = vld [vmem:[%s2998_s2 + $0x378] sm:$0xff]  ;;  %v709_v60 = vld [vmem:[%s2998_s2 + $0x180] sm:$0xff] }
  0x4a   :  { %1498 = vmatmul.msk.f32.vlgmr.msrb.gmra.mxu1 %vm128_vm1, %v1568_v10  ;;  %1042 = vmatpush.msra.mxu3 %v687_v61  ;;  %v734_v61 = vld [vmem:[%s2998_s2 + $0x248] sm:$0xff] }
  0x4b   :  { %1058 = vmatpush.msrb.mxu0 %v707_v62  ;;  %1077 = vmatpush.msrb.mxu1 %v724_v63  ;;  %v751_v62 = vld [vmem:[%s2998_s2 + $0x2d0] sm:$0xff] }
  0x4c   :  { %1024 = vmatpush.msra.mxu2 %v669_v0  ;;  %1043 = vmatpush.msra.mxu3 %v686_v1  ;;  %v771_v63 = vld [vmem:[%s2998_s2 + $0x370] sm:$0xff]  ;;  %v788_v0 = vld [vmem:[%s2998_s2 + $0x3f8] sm:$0xff]  ;;  %v733_v1 = vld [vmem:[%s2998_s2 + $0x240] sm:$0xff] }
  0x4d   :  { %1059 = vmatpush.msrb.mxu0 %v706_v2  ;;  %1078 = vmatpush.msrb.mxu1 %v723_v3  ;;  %v750_v2 = vld [vmem:[%s2998_s2 + $0x2c8] sm:$0xff] }
  0x4e   :  { %1025 = vmatpush.msra.mxu2 %v668_v4  ;;  %1044 = vmatpush.msra.mxu3 %v685_v5  ;;  %v770_v3 = vld [vmem:[%s2998_s2 + $0x368] sm:$0xff]  ;;  %v787_v4 = vld [vmem:[%s2998_s2 + $0x3f0] sm:$0xff]  ;;  %v732_v5 = vld [vmem:[%s2998_s2 + $0x238] sm:$0xff] }
  0x4f   :  { %1060 = vmatpush.msrb.mxu0 %v705_v6  ;;  %1079 = vmatpush.msrb.mxu1 %v722_v7  ;;  %v749_v6 = vld [vmem:[%s2998_s2 + $0x2c0] sm:$0xff]  ;;  %v786_v7 = vld [vmem:[%s2998_s2 + $0x3e8] sm:$0xff] }
  0x50   :  { %1026 = vmatpush.msra.mxu2 %v667_v8  ;;  %1045 = vmatpush.msra.mxu3 %v684_v9  ;;  %v731_v8 = vld [vmem:[%s2998_s2 + $0x230] sm:$0xff]  ;;  %v748_v9 = vld [vmem:[%s2998_s2 + $0x2b8] sm:$0xff] }
  0x51   :  { %1061 = vmatpush.msrb.mxu0 %v704_v11  ;;  %1080 = vmatpush.msrb.mxu1 %v721_v12  ;;  %v768_v11 = vld [vmem:[%s2998_s2 + $0x358] sm:$0xff]  ;;  %v785_v12 = vld [vmem:[%s2998_s2 + $0x3e0] sm:$0xff] }
  0x52   :  { %1027 = vmatpush.msra.mxu2 %v666_v13  ;;  %1046 = vmatpush.msra.mxu3 %v683_v14  ;;  %v730_v13 = vld [vmem:[%s2998_s2 + $0x228] sm:$0xff]  ;;  %v747_v14 = vld [vmem:[%s2998_s2 + $0x2b0] sm:$0xff] }
  0x53   :  { %1062 = vmatpush.msrb.mxu0 %v703_v15  ;;  %1081 = vmatpush.msrb.mxu1 %v720_v16  ;;  %v767_v15 = vld [vmem:[%s2998_s2 + $0x350] sm:$0xff]  ;;  %v784_v16 = vld [vmem:[%s2998_s2 + $0x3d8] sm:$0xff] }
  0x54   :  { %1028 = vmatpush.msra.mxu2 %v665_v17  ;;  %1047 = vmatpush.msra.mxu3 %v682_v18  ;;  %v729_v17 = vld [vmem:[%s2998_s2 + $0x220] sm:$0xff]  ;;  %v746_v18 = vld [vmem:[%s2998_s2 + $0x2a8] sm:$0xff] }
  0x55   :  { %1063 = vmatpush.msrb.mxu0 %v702_v19  ;;  %1082 = vmatpush.msrb.mxu1 %v719_v20  ;;  %v766_v19 = vld [vmem:[%s2998_s2 + $0x348] sm:$0xff]  ;;  %v783_v20 = vld [vmem:[%s2998_s2 + $0x3d0] sm:$0xff] }
  0x56   :  { %1029 = vmatpush.msra.mxu2 %v664_v21  ;;  %1048 = vmatpush.msra.mxu3 %v681_v22  ;;  %v728_v21 = vld [vmem:[%s2998_s2 + $0x218] sm:$0xff]  ;;  %v745_v22 = vld [vmem:[%s2998_s2 + $0x2a0] sm:$0xff] }
  0x57   :  { %1064 = vmatpush.msrb.mxu0 %v701_v23  ;;  %1083 = vmatpush.msrb.mxu1 %v718_v24  ;;  %v765_v23 = vld [vmem:[%s2998_s2 + $0x340] sm:$0xff]  ;;  %v782_v24 = vld [vmem:[%s2998_s2 + $0x3c8] sm:$0xff] }
  0x58   :  { %1030 = vmatpush.msra.mxu2 %v663_v25  ;;  %1049 = vmatpush.msra.mxu3 %v680_v26  ;;  %v727_v25 = vld [vmem:[%s2998_s2 + $0x210] sm:$0xff]  ;;  %v744_v26 = vld [vmem:[%s2998_s2 + $0x298] sm:$0xff] }
  0x59   :  { %1065 = vmatpush.msrb.mxu0 %v700_v27  ;;  %1084 = vmatpush.msrb.mxu1 %v717_v28  ;;  %v764_v27 = vld [vmem:[%s2998_s2 + $0x338] sm:$0xff]  ;;  %v781_v28 = vld [vmem:[%s2998_s2 + $0x3c0] sm:$0xff] }
  0x5a   :  { %1031 = vmatpush.msra.mxu2 %v662_v29  ;;  %1050 = vmatpush.msra.mxu3 %v679_v30  ;;  %v726_v29 = vld [vmem:[%s2998_s2 + $0x208] sm:$0xff]  ;;  %v743_v30 = vld [vmem:[%s2998_s2 + $0x290] sm:$0xff] }
  0x5b   :  { %1066 = vmatpush.msrb.mxu0 %v699_v31  ;;  %1085 = vmatpush.msrb.mxu1 %v716_v32  ;;  %v763_v31 = vld [vmem:[%s2998_s2 + $0x330] sm:$0xff]  ;;  %v780_v32 = vld [vmem:[%s2998_s2 + $0x3b8] sm:$0xff] }
  0x5c   :  { %1032 = vmatpush.msra.mxu2 %v661_v33  ;;  %1051 = vmatpush.msra.mxu3 %v678_v34  ;;  %v725_v33 = vld [vmem:[%s2998_s2 + $0x200] sm:$0xff]  ;;  %v742_v34 = vld [vmem:[%s2998_s2 + $0x288] sm:$0xff] }
  0x5d   :  { %1067 = vmatpush.msrb.mxu0 %v698_v35  ;;  %1086 = vmatpush.msrb.mxu1 %v715_v36  ;;  %v762_v35 = vld [vmem:[%s2998_s2 + $0x328] sm:$0xff]  ;;  %v779_v36 = vld [vmem:[%s2998_s2 + $0x3b0] sm:$0xff] }
  0x5e   :  { %1500 = vmatmul.msk.f32.vlgmr.msrb.gmra.mxu2 %vm128_vm1, %v1568_v10  ;;  %1052 = vmatpush.msra.mxu3 %v677_v37  ;;  %v741_v37 = vld [vmem:[%s2998_s2 + $0x280] sm:$0xff] }
  0x5f   :  { %1097 = vmatpush.msrb.mxu2 %v740_v38  ;;  %1068 = vmatpush.msrb.mxu0 %v697_v39  ;;  %v761_v38 = vld [vmem:[%s2998_s2 + $0x320] sm:$0xff]  ;;  %v778_v39 = vld [vmem:[%s2998_s2 + $0x3a8] sm:$0xff] }
  0x60   :  { %1087 = vmatpush.msrb.mxu1 %v714_v40  ;;  %1502 = vmatmul.msk.f32.vlgmr.msrb.gmra.mxu3 %vm128_vm1, %v1568_v10  ;;  %v760_v40 = vld [vmem:[%s2998_s2 + $0x318] sm:$0xff] }
  0x61   :  { %1098 = vmatpush.msrb.mxu2 %v739_v41  ;;  %1117 = vmatpush.msrb.mxu3 %v756_v42  ;;  %v777_v41 = vld [vmem:[%s2998_s2 + $0x3a0] sm:$0xff]  ;;  %v759_v42 = vld [vmem:[%s2998_s2 + $0x310] sm:$0xff] }
  0x62   :  { %1069 = vmatpush.msrb.mxu0 %v696_v43  ;;  %1088 = vmatpush.msrb.mxu1 %v713_v44  ;;  %v776_v43 = vld [vmem:[%s2998_s2 + $0x398] sm:$0xff]  ;;  %v758_v44 = vld [vmem:[%s2998_s2 + $0x308] sm:$0xff] }
  0x63   :  { %1099 = vmatpush.msrb.mxu2 %v738_v45  ;;  %1118 = vmatpush.msrb.mxu3 %v755_v46  ;;  %v775_v45 = vld [vmem:[%s2998_s2 + $0x390] sm:$0xff] }
  0x64   :  { %1070 = vmatpush.msrb.mxu0 %v695_v47  ;;  %1089 = vmatpush.msrb.mxu1 %v712_v48 }
  0x65   :  { %1100 = vmatpush.msrb.mxu2 %v737_v49  ;;  %1119 = vmatpush.msrb.mxu3 %v754_v50  ;;  %v804_v50 = vld [vmem:[%s2998_s2 + $0x478] sm:$0xff] }
  0x66   :  { %1071 = vmatpush.msrb.mxu0 %v694_v51  ;;  %1090 = vmatpush.msrb.mxu1 %v711_v52  ;;  %v820_v51 = vld [vmem:[%s2998_s2 + $0x4f8] sm:$0xff]  ;;  %v757_v52 = vld [vmem:[%s2998_s2 + $0x300] sm:$0xff] }
  0x67   :  { %1101 = vmatpush.msrb.mxu2 %v736_v53  ;;  %1120 = vmatpush.msrb.mxu3 %v753_v54  ;;  %v774_v53 = vld [vmem:[%s2998_s2 + $0x388] sm:$0xff]  ;;  %v803_v54 = vld [vmem:[%s2998_s2 + $0x470] sm:$0xff] }
  0x68   :  { %1072 = vmatpush.msrb.mxu0 %v693_v55  ;;  %1091 = vmatpush.msrb.mxu1 %v710_v56  ;;  %v819_v55 = vld [vmem:[%s2998_s2 + $0x4f0] sm:$0xff]  ;;  %v773_v56 = vld [vmem:[%s2998_s2 + $0x380] sm:$0xff] }
  0x69   :  { %1504 = vmatmul.msk.f32.vlgmr.msra.gmra.mxu0 %vm128_vm1, %v1568_v10  ;;  %1102 = vmatpush.msrb.mxu2 %v735_v57  ;;  %v802_v57 = vld [vmem:[%s2998_s2 + $0x468] sm:$0xff] }
  0x6a   :  { %1121 = vmatpush.msrb.mxu3 %v752_v58  ;;  %1137 = vmatpush.msra.mxu0 %v772_v59  ;;  %v818_v58 = vld [vmem:[%s2998_s2 + $0x4e8] sm:$0xff]  ;;  %v801_v59 = vld [vmem:[%s2998_s2 + $0x460] sm:$0xff] }
  0x6b   :  { %1092 = vmatpush.msrb.mxu1 %v709_v60  ;;  %1103 = vmatpush.msrb.mxu2 %v734_v61  ;;  %v817_v60 = vld [vmem:[%s2998_s2 + $0x4e0] sm:$0xff]  ;;  %v800_v61 = vld [vmem:[%s2998_s2 + $0x458] sm:$0xff] }
  0x6c   :  { %1506 = vmatmul.msk.f32.vlgmr.msra.gmra.mxu1 %vm128_vm1, %v1568_v10  ;;  %1122 = vmatpush.msrb.mxu3 %v751_v62  ;;  %v769_v10 = vld [vmem:[%s2998_s2 + $0x360] sm:$0xff]  ;;  %v816_v62 = vld [vmem:[%s2998_s2 + $0x4d8] sm:$0xff] }
  0x6d   :  { %1138 = vmatpush.msra.mxu0 %v771_v63  ;;  %1157 = vmatpush.msra.mxu1 %v788_v0 }
  0x6e   :  { %1104 = vmatpush.msrb.mxu2 %v733_v1  ;;  %1123 = vmatpush.msrb.mxu3 %v750_v2  ;;  %v799_v1 = vld [vmem:[%s2998_s2 + $0x450] sm:$0xff] }
  0x6f   :  { %1139 = vmatpush.msra.mxu0 %v770_v3  ;;  %1158 = vmatpush.msra.mxu1 %v787_v4  ;;  %v836_v4 = vld [vmem:[%s2998_s2 + $0x578] sm:$0xff] }
  0x70   :  { %1105 = vmatpush.msrb.mxu2 %v732_v5  ;;  %1124 = vmatpush.msrb.mxu3 %v749_v6  ;;  %v798_v5 = vld [vmem:[%s2998_s2 + $0x448] sm:$0xff]  ;;  %v815_v6 = vld [vmem:[%s2998_s2 + $0x4d0] sm:$0xff] }
  0x71   :  { %1140 = vmatpush.msra.mxu0 %v769_v10  ;;  %1159 = vmatpush.msra.mxu1 %v786_v7  ;;  %v835_v10 = vld [vmem:[%s2998_s2 + $0x570] sm:$0xff]  ;;  %v852_v7 = vld [vmem:[%s2998_s2 + $0x5f8] sm:$0xff] }
  0x72   :  { %1106 = vmatpush.msrb.mxu2 %v731_v8  ;;  %1125 = vmatpush.msrb.mxu3 %v748_v9  ;;  %v797_v8 = vld [vmem:[%s2998_s2 + $0x440] sm:$0xff]  ;;  %v814_v9 = vld [vmem:[%s2998_s2 + $0x4c8] sm:$0xff] }
  0x73   :  { %1141 = vmatpush.msra.mxu0 %v768_v11  ;;  %1160 = vmatpush.msra.mxu1 %v785_v12  ;;  %v834_v11 = vld [vmem:[%s2998_s2 + $0x568] sm:$0xff]  ;;  %v851_v12 = vld [vmem:[%s2998_s2 + $0x5f0] sm:$0xff] }
  0x74   :  { %1107 = vmatpush.msrb.mxu2 %v730_v13  ;;  %1126 = vmatpush.msrb.mxu3 %v747_v14  ;;  %v796_v13 = vld [vmem:[%s2998_s2 + $0x438] sm:$0xff]  ;;  %v813_v14 = vld [vmem:[%s2998_s2 + $0x4c0] sm:$0xff] }
  0x75   :  { %1142 = vmatpush.msra.mxu0 %v767_v15  ;;  %1161 = vmatpush.msra.mxu1 %v784_v16  ;;  %v833_v15 = vld [vmem:[%s2998_s2 + $0x560] sm:$0xff]  ;;  %v850_v16 = vld [vmem:[%s2998_s2 + $0x5e8] sm:$0xff] }
  0x76   :  { %1108 = vmatpush.msrb.mxu2 %v729_v17  ;;  %1127 = vmatpush.msrb.mxu3 %v746_v18 }
  0x77   :  { %1143 = vmatpush.msra.mxu0 %v766_v19  ;;  %1162 = vmatpush.msra.mxu1 %v783_v20  ;;  %v812_v19 = vld [vmem:[%s2998_s2 + $0x4b8] sm:$0xff] }
  0x78   :  { %1109 = vmatpush.msrb.mxu2 %v728_v21  ;;  %1128 = vmatpush.msrb.mxu3 %v745_v22  ;;  %v795_v22 = vld [vmem:[%s2998_s2 + $0x430] sm:$0xff] }
  0x79   :  { %1144 = vmatpush.msra.mxu0 %v765_v23  ;;  %1163 = vmatpush.msra.mxu1 %v782_v24  ;;  %v832_v23 = vld [vmem:[%s2998_s2 + $0x558] sm:$0xff]  ;;  %v849_v24 = vld [vmem:[%s2998_s2 + $0x5e0] sm:$0xff] }
  0x7a   :  { %1110 = vmatpush.msrb.mxu2 %v727_v25  ;;  %1129 = vmatpush.msrb.mxu3 %v744_v26  ;;  %v794_v25 = vld [vmem:[%s2998_s2 + $0x428] sm:$0xff]  ;;  %v811_v26 = vld [vmem:[%s2998_s2 + $0x4b0] sm:$0xff] }
  0x7b   :  { %1145 = vmatpush.msra.mxu0 %v764_v27  ;;  %1164 = vmatpush.msra.mxu1 %v781_v28  ;;  %v831_v27 = vld [vmem:[%s2998_s2 + $0x550] sm:$0xff]  ;;  %v848_v28 = vld [vmem:[%s2998_s2 + $0x5d8] sm:$0xff] }
  0x7c   :  { %1111 = vmatpush.msrb.mxu2 %v726_v29  ;;  %1130 = vmatpush.msrb.mxu3 %v743_v30  ;;  %v793_v29 = vld [vmem:[%s2998_s2 + $0x420] sm:$0xff]  ;;  %v810_v30 = vld [vmem:[%s2998_s2 + $0x4a8] sm:$0xff] }
  0x7d   :  { %1146 = vmatpush.msra.mxu0 %v763_v31  ;;  %1165 = vmatpush.msra.mxu1 %v780_v32  ;;  %v830_v31 = vld [vmem:[%s2998_s2 + $0x548] sm:$0xff]  ;;  %v847_v32 = vld [vmem:[%s2998_s2 + $0x5d0] sm:$0xff] }
  0x7e   :  { %1112 = vmatpush.msrb.mxu2 %v725_v33  ;;  %1131 = vmatpush.msrb.mxu3 %v742_v34  ;;  %v792_v33 = vld [vmem:[%s2998_s2 + $0x418] sm:$0xff]  ;;  %v809_v34 = vld [vmem:[%s2998_s2 + $0x4a0] sm:$0xff] }
  0x7f   :  { %1147 = vmatpush.msra.mxu0 %v762_v35  ;;  %1166 = vmatpush.msra.mxu1 %v779_v36  ;;  %v829_v36 = vld [vmem:[%s2998_s2 + $0x540] sm:$0xff] }
  0x80   :  { %1132 = vmatpush.msrb.mxu3 %v741_v37  ;;  %v846_v37 = vld [vmem:[%s2998_s2 + $0x5c8] sm:$0xff] }
  0x81   :  { %1148 = vmatpush.msra.mxu0 %v761_v38  ;;  %1167 = vmatpush.msra.mxu1 %v778_v39  ;;  %v791_v38 = vld [vmem:[%s2998_s2 + $0x410] sm:$0xff]  ;;  %v808_v39 = vld [vmem:[%s2998_s2 + $0x498] sm:$0xff] }
  0x83   :  { %1149 = vmatpush.msra.mxu0 %v760_v40  ;;  %1168 = vmatpush.msra.mxu1 %v777_v41  ;;  %v828_v41 = vld [vmem:[%s2998_s2 + $0x538] sm:$0xff] }
  0x85   :  { %1150 = vmatpush.msra.mxu0 %v759_v42  ;;  %1169 = vmatpush.msra.mxu1 %v776_v43  ;;  %v845_v42 = vld [vmem:[%s2998_s2 + $0x5c0] sm:$0xff] }
  0x87   :  { %1151 = vmatpush.msra.mxu0 %v758_v44  ;;  %1170 = vmatpush.msra.mxu1 %v775_v45  ;;  %v790_v44 = vld [vmem:[%s2998_s2 + $0x408] sm:$0xff] }
  0x88   :  { %v216_v46 = vpop.f32.mrf.mxu0  ;;  %v236_v47 = vpop.f32.mrf.mxu1 }
  0x89   :  { %v639_v48 = vmax.f32 %v216_v46, 0.0  ;;  %v640_v49 = vmax.f32 %v236_v47, 0.0  ;;  %1152 = vmatpush.msra.mxu0 %v757_v52  ;;  %1171 = vmatpush.msra.mxu1 %v774_v53  ;;  %v807_v46 = vld [vmem:[%s2998_s2 + $0x490] sm:$0xff]  ;;  %v806_v52 = vld [vmem:[%s2998_s2 + $0x488] sm:$0xff] }
  0x8a   :  { %v827_v47 = vld [vmem:[%s2998_s2 + $0x530] sm:$0xff] }
  0x8b   :  { %1033 = vmatmul.f32.vlgmr.msra.gmra.mxu2 %v639_v48  ;;  %1053 = vmatmul.f32.vlgmr.msra.gmra.mxu3 %v640_v49  ;;  %v844_v49 = vld [vmem:[%s2998_s2 + $0x5b8] sm:$0xff] }
  0x8c   :  { %1177 = vmatpush.msra.mxu2 %v804_v50  ;;  %1197 = vmatpush.msra.mxu3 %v820_v51  ;;  %v789_v50 = vld [vmem:[%s2998_s2 + $0x400] sm:$0xff] }
  0x8d   :  { %1172 = vmatpush.msra.mxu1 %v773_v56  ;;  %v805_v56 = vld [vmem:[%s2998_s2 + $0x480] sm:$0xff] }
  0x8e   :  { %1178 = vmatpush.msra.mxu2 %v803_v54  ;;  %1198 = vmatpush.msra.mxu3 %v819_v55  ;;  %v826_v54 = vld [vmem:[%s2998_s2 + $0x528] sm:$0xff]  ;;  %v843_v55 = vld [vmem:[%s2998_s2 + $0x5b0] sm:$0xff] }
  0x90   :  { %1179 = vmatpush.msra.mxu2 %v802_v57  ;;  %1199 = vmatpush.msra.mxu3 %v818_v58  ;;  %v868_v58 = vld [vmem:[%s2998_s2 + $0x678] sm:$0xff] }
  0x92   :  { %1180 = vmatpush.msra.mxu2 %v801_v59  ;;  %1200 = vmatpush.msra.mxu3 %v817_v60  ;;  %v256_v63 = vpop.f32.mrf.mxu0  ;;  %v276_v0 = vpop.f32.mrf.mxu1  ;;  %v825_v59 = vld [vmem:[%s2998_s2 + $0x520] sm:$0xff]  ;;  %v842_v60 = vld [vmem:[%s2998_s2 + $0x5a8] sm:$0xff] }
  0x93   :  { %v641_v2 = vmax.f32 %v256_v63, 0.0  ;;  %v642_v3 = vmax.f32 %v276_v0, 0.0  ;;  %v824_v63 = vld [vmem:[%s2998_s2 + $0x518] sm:$0xff]  ;;  %v841_v0 = vld [vmem:[%s2998_s2 + $0x5a0] sm:$0xff] }
  0x94   :  { %1181 = vmatpush.msra.mxu2 %v800_v61  ;;  %1201 = vmatpush.msra.mxu3 %v816_v62  ;;  %v867_v61 = vld [vmem:[%s2998_s2 + $0x670] sm:$0xff]  ;;  %v884_v62 = vld [vmem:[%s2998_s2 + $0x6f8] sm:$0xff] }
  0x95   :  { %1073 = vmatmul.f32.vlgmr.msrb.gmra.mxu0 %v641_v2  ;;  %1093 = vmatmul.f32.vlgmr.msrb.gmra.mxu1 %v642_v3  ;;  %v883_v2 = vld [vmem:[%s2998_s2 + $0x6f0] sm:$0xff] }
  0x96   :  { %1182 = vmatpush.msra.mxu2 %v799_v1  ;;  %1217 = vmatpush.msrb.mxu0 %v836_v4  ;;  %v336_v35 = vpop.f32.mrf.mxu2  ;;  %v356_v43 = vpop.f32.mrf.mxu3  ;;  %v866_v1 = vld [vmem:[%s2998_s2 + $0x668] sm:$0xff]  ;;  %v823_v3 = vld [vmem:[%s2998_s2 + $0x510] sm:$0xff]  ;;  %v840_v4 = vld [vmem:[%s2998_s2 + $0x598] sm:$0xff] }
  0x97   :  { %1202 = vmatpush.msra.mxu3 %v815_v6  ;;  %1237 = vmatpush.msrb.mxu1 %v852_v7  ;;  %v645_v40 = vmax.f32 %v336_v35, 0.0  ;;  %v646_v48 = vmax.f32 %v356_v43, 0.0  ;;  %v882_v6 = vld [vmem:[%s2998_s2 + $0x6e8] sm:$0xff]  ;;  %v896_v35 = vld [vmem:[%s2998_s2 + $0x758] sm:$0xff] }
  0x98   :  { %1183 = vmatpush.msra.mxu2 %v798_v5  ;;  %1218 = vmatpush.msrb.mxu0 %v835_v10  ;;  %v865_v5 = vld [vmem:[%s2998_s2 + $0x660] sm:$0xff]  ;;  %v822_v7 = vld [vmem:[%s2998_s2 + $0x508] sm:$0xff] }
  0x99   :  { %1203 = vmatpush.msra.mxu3 %v814_v9  ;;  %1238 = vmatpush.msrb.mxu1 %v851_v12  ;;  %v864_v9 = vld [vmem:[%s2998_s2 + $0x658] sm:$0xff]  ;;  %v894_v43 = vld [vmem:[%s2998_s2 + $0x748] sm:$0xff] }
  0x9a   :  { %1184 = vmatpush.msra.mxu2 %v797_v8  ;;  %1219 = vmatpush.msrb.mxu0 %v834_v11  ;;  %v839_v8 = vld [vmem:[%s2998_s2 + $0x590] sm:$0xff]  ;;  %v881_v11 = vld [vmem:[%s2998_s2 + $0x6e0] sm:$0xff] }
  0x9b   :  { %1204 = vmatpush.msra.mxu3 %v813_v14  ;;  %1239 = vmatpush.msrb.mxu1 %v850_v16  ;;  %v821_v14 = vld [vmem:[%s2998_s2 + $0x500] sm:$0xff]  ;;  %v863_v16 = vld [vmem:[%s2998_s2 + $0x650] sm:$0xff] }
  0x9c   :  { %v296_v17 = vpop.f32.mrf.mxu0  ;;  %v316_v18 = vpop.f32.mrf.mxu1  ;;  %1185 = vmatpush.msra.mxu2 %v796_v13  ;;  %1220 = vmatpush.msrb.mxu0 %v833_v15  ;;  %v838_v15 = vld [vmem:[%s2998_s2 + $0x588] sm:$0xff] }
  0x9d   :  { %v643_v20 = vmax.f32 %v296_v17, 0.0  ;;  %v644_v21 = vmax.f32 %v316_v18, 0.0  ;;  %1205 = vmatpush.msra.mxu3 %v812_v19  ;;  %1240 = vmatpush.msrb.mxu1 %v849_v24  ;;  %v880_v17 = vld [vmem:[%s2998_s2 + $0x6d8] sm:$0xff] }
  0x9e   :  { %1186 = vmatpush.msra.mxu2 %v795_v22  ;;  %1221 = vmatpush.msrb.mxu0 %v832_v23  ;;  %v900_v18 = vld [vmem:[%s2998_s2 + $0x778] sm:$0xff]  ;;  %v879_v22 = vld [vmem:[%s2998_s2 + $0x6d0] sm:$0xff] }
  0x9f   :  { %1113 = vmatmul.f32.vlgmr.msrb.gmra.mxu2 %v643_v20  ;;  %1133 = vmatmul.f32.vlgmr.msrb.gmra.mxu3 %v644_v21  ;;  %v837_v20 = vld [vmem:[%s2998_s2 + $0x580] sm:$0xff]  ;;  %v862_v21 = vld [vmem:[%s2998_s2 + $0x648] sm:$0xff]  ;;  %v899_v23 = vld [vmem:[%s2998_s2 + $0x770] sm:$0xff] }
  0xa0   :  { %1187 = vmatpush.msra.mxu2 %v794_v25  ;;  %1206 = vmatpush.msra.mxu3 %v811_v26  ;;  %v916_v24 = vld [vmem:[%s2998_s2 + $0x7f8] sm:$0xff]  ;;  %v861_v25 = vld [vmem:[%s2998_s2 + $0x640] sm:$0xff]  ;;  %v878_v26 = vld [vmem:[%s2998_s2 + $0x6c8] sm:$0xff] }
  0xa1   :  { %1222 = vmatpush.msrb.mxu0 %v831_v27  ;;  %1241 = vmatpush.msrb.mxu1 %v848_v28  ;;  %v898_v27 = vld [vmem:[%s2998_s2 + $0x768] sm:$0xff]  ;;  %v915_v28 = vld [vmem:[%s2998_s2 + $0x7f0] sm:$0xff] }
  0xa2   :  { %1188 = vmatpush.msra.mxu2 %v793_v29  ;;  %1207 = vmatpush.msra.mxu3 %v810_v30  ;;  %v860_v29 = vld [vmem:[%s2998_s2 + $0x638] sm:$0xff]  ;;  %v877_v30 = vld [vmem:[%s2998_s2 + $0x6c0] sm:$0xff] }
  0xa3   :  { %1223 = vmatpush.msrb.mxu0 %v830_v31  ;;  %1242 = vmatpush.msrb.mxu1 %v847_v32  ;;  %v897_v31 = vld [vmem:[%s2998_s2 + $0x760] sm:$0xff]  ;;  %v914_v32 = vld [vmem:[%s2998_s2 + $0x7e8] sm:$0xff] }
  0xa4   :  { %1189 = vmatpush.msra.mxu2 %v792_v33  ;;  %1208 = vmatpush.msra.mxu3 %v809_v34  ;;  %v859_v33 = vld [vmem:[%s2998_s2 + $0x630] sm:$0xff]  ;;  %v876_v34 = vld [vmem:[%s2998_s2 + $0x6b8] sm:$0xff] }
  0xa5   :  { %1224 = vmatpush.msrb.mxu0 %v829_v36  ;;  %1243 = vmatpush.msrb.mxu1 %v846_v37  ;;  %v913_v36 = vld [vmem:[%s2998_s2 + $0x7e0] sm:$0xff]  ;;  %v858_v37 = vld [vmem:[%s2998_s2 + $0x628] sm:$0xff] }
  0xa6   :  { %1190 = vmatpush.msra.mxu2 %v791_v38  ;;  %1209 = vmatpush.msra.mxu3 %v808_v39  ;;  %v376_v45 = vpop.f32.mrf.mxu0  ;;  %v396_v51 = vpop.f32.mrf.mxu1  ;;  %v875_v38 = vld [vmem:[%s2998_s2 + $0x6b0] sm:$0xff] }
  0xa7   :  { %1225 = vmatpush.msrb.mxu0 %v828_v41  ;;  %1244 = vmatpush.msrb.mxu1 %v845_v42  ;;  %v647_v53 = vmax.f32 %v376_v45, 0.0  ;;  %v648_v57 = vmax.f32 %v396_v51, 0.0  ;;  %v416_v10 = vpop.f32.mrf.mxu2  ;;  %v436_v13 = vpop.f32.mrf.mxu3  ;;  %v895_v39 = vld [vmem:[%s2998_s2 + $0x750] sm:$0xff]  ;;  %v857_v41 = vld [vmem:[%s2998_s2 + $0x620] sm:$0xff]  ;;  %v874_v42 = vld [vmem:[%s2998_s2 + $0x6a8] sm:$0xff] }
  0xa8   :  { %1153 = vmatmul.f32.vlgmr.msra.gmra.mxu0 %v645_v40  ;;  %1191 = vmatpush.msra.mxu2 %v790_v44  ;;  %v649_v12 = vmax.f32 %v416_v10, 0.0  ;;  %v650_v19 = vmax.f32 %v436_v13, 0.0  ;;  %v912_v40 = vld [vmem:[%s2998_s2 + $0x7d8] sm:$0xff]  ;;  %v911_v44 = vld [vmem:[%s2998_s2 + $0x7d0] sm:$0xff]  ;;  %v929_v13 = vld [vmem:[%s2998_s2 + $0x860] sm:$0xff] }
  0xa9   :  { %1210 = vmatpush.msra.mxu3 %v807_v46  ;;  %1226 = vmatpush.msrb.mxu0 %v827_v47  ;;  %v856_v45 = vld [vmem:[%s2998_s2 + $0x618] sm:$0xff]  ;;  %v873_v46 = vld [vmem:[%s2998_s2 + $0x6a0] sm:$0xff] }
  0xaa   :  { %1245 = vmatpush.msrb.mxu1 %v844_v49  ;;  %1192 = vmatpush.msra.mxu2 %v789_v50  ;;  %v893_v47 = vld [vmem:[%s2998_s2 + $0x740] sm:$0xff]  ;;  %v855_v49 = vld [vmem:[%s2998_s2 + $0x610] sm:$0xff]  ;;  %v872_v50 = vld [vmem:[%s2998_s2 + $0x698] sm:$0xff] }
  0xab   :  { %1173 = vmatmul.f32.vlgmr.msra.gmra.mxu1 %v646_v48  ;;  %1211 = vmatpush.msra.mxu3 %v806_v52  ;;  %v910_v48 = vld [vmem:[%s2998_s2 + $0x7c8] sm:$0xff]  ;;  %v892_v51 = vld [vmem:[%s2998_s2 + $0x738] sm:$0xff]  ;;  %v909_v52 = vld [vmem:[%s2998_s2 + $0x7c0] sm:$0xff] }
  0xac   :  { %1227 = vmatpush.msrb.mxu0 %v826_v54  ;;  %1246 = vmatpush.msrb.mxu1 %v843_v55  ;;  %v854_v54 = vld [vmem:[%s2998_s2 + $0x608] sm:$0xff]  ;;  %v871_v55 = vld [vmem:[%s2998_s2 + $0x690] sm:$0xff]  ;;  %v888_v10 = vld [vmem:[%s2998_s2 + $0x718] sm:$0xff] }
  0xad   :  { %1193 = vmatmul.f32.vlgmr.msra.gmra.mxu2 %v647_v53  ;;  %1212 = vmatpush.msra.mxu3 %v805_v56  ;;  %v891_v56 = vld [vmem:[%s2998_s2 + $0x730] sm:$0xff] }
  0xae   :  { %1257 = vmatpush.msrb.mxu2 %v868_v58  ;;  %1228 = vmatpush.msrb.mxu0 %v825_v59  ;;  %v853_v59 = vld [vmem:[%s2998_s2 + $0x600] sm:$0xff] }
  0xaf   :  { %1247 = vmatpush.msrb.mxu1 %v842_v60  ;;  %1213 = vmatmul.f32.vlgmr.msra.gmra.mxu3 %v648_v57  ;;  %v908_v57 = vld [vmem:[%s2998_s2 + $0x7b8] sm:$0xff]  ;;  %v870_v60 = vld [vmem:[%s2998_s2 + $0x688] sm:$0xff] }
  0xb0   :  { %1258 = vmatpush.msrb.mxu2 %v867_v61  ;;  %1277 = vmatpush.msrb.mxu3 %v884_v62  ;;  %v890_v62 = vld [vmem:[%s2998_s2 + $0x728] sm:$0xff] }
  0xb1   :  { %1229 = vmatpush.msrb.mxu0 %v824_v63  ;;  %1248 = vmatpush.msrb.mxu1 %v841_v0  ;;  %v907_v63 = vld [vmem:[%s2998_s2 + $0x7b0] sm:$0xff]  ;;  %v869_v0 = vld [vmem:[%s2998_s2 + $0x680] sm:$0xff] }
  0xb2   :  { %1259 = vmatpush.msrb.mxu2 %v866_v1  ;;  %1278 = vmatpush.msrb.mxu3 %v883_v2  ;;  %v456_v53 = vpop.f32.mrf.mxu0  ;;  %v932_v2 = vld [vmem:[%s2998_s2 + $0x878] sm:$0xff] }
  0xb3   :  { %1230 = vmatpush.msrb.mxu0 %v823_v3  ;;  %1249 = vmatpush.msrb.mxu1 %v840_v4  ;;  %v651_v61 = vmax.f32 %v456_v53, 0.0  ;;  %v889_v3 = vld [vmem:[%s2998_s2 + $0x720] sm:$0xff]  ;;  %v906_v4 = vld [vmem:[%s2998_s2 + $0x7a8] sm:$0xff]  ;;  %v920_v53 = vld [vmem:[%s2998_s2 + $0x818] sm:$0xff] }
  0xb4   :  { %1260 = vmatpush.msrb.mxu2 %v865_v5  ;;  %1279 = vmatpush.msrb.mxu3 %v882_v6  ;;  %v931_v5 = vld [vmem:[%s2998_s2 + $0x870] sm:$0xff]  ;;  %v948_v6 = vld [vmem:[%s2998_s2 + $0x8f8] sm:$0xff] }
  0xb5   :  { %1231 = vmatpush.msrb.mxu0 %v822_v7  ;;  %1250 = vmatpush.msrb.mxu1 %v839_v8  ;;  %v476_v58 = vpop.f32.mrf.mxu1  ;;  %v905_v7 = vld [vmem:[%s2998_s2 + $0x7a0] sm:$0xff]  ;;  %v930_v8 = vld [vmem:[%s2998_s2 + $0x868] sm:$0xff] }
  0xb6   :  { %1261 = vmatpush.msrb.mxu2 %v864_v9  ;;  %1280 = vmatpush.msrb.mxu3 %v881_v11  ;;  %v652_v1 = vmax.f32 %v476_v58, 0.0  ;;  %v947_v9 = vld [vmem:[%s2998_s2 + $0x8f0] sm:$0xff]  ;;  %v936_v58 = vld [vmem:[%s2998_s2 + $0x898] sm:$0xff] }
  0xb7   :  { %1232 = vmatpush.msrb.mxu0 %v821_v14  ;;  %1251 = vmatpush.msrb.mxu1 %v838_v15  ;;  %v887_v11 = vld [vmem:[%s2998_s2 + $0x710] sm:$0xff]  ;;  %v946_v14 = vld [vmem:[%s2998_s2 + $0x8e8] sm:$0xff] }
  0xb8   :  { %1233 = vmatmul.f32.vlgmr.msrb.gmra.mxu0 %v649_v12  ;;  %1262 = vmatpush.msrb.mxu2 %v863_v16  ;;  %v904_v12 = vld [vmem:[%s2998_s2 + $0x798] sm:$0xff]  ;;  %v886_v16 = vld [vmem:[%s2998_s2 + $0x708] sm:$0xff] }
  0xb9   :  { %1281 = vmatpush.msrb.mxu3 %v880_v17  ;;  %1297 = vmatpush.msra.mxu0 %v900_v18  ;;  %v903_v17 = vld [vmem:[%s2998_s2 + $0x790] sm:$0xff]  ;;  %v928_v18 = vld [vmem:[%s2998_s2 + $0x858] sm:$0xff] }
  0xba   :  { %1252 = vmatpush.msrb.mxu1 %v837_v20  ;;  %1263 = vmatpush.msrb.mxu2 %v862_v21 }
  0xbb   :  { %1253 = vmatmul.f32.vlgmr.msrb.gmra.mxu1 %v650_v19  ;;  %1282 = vmatpush.msrb.mxu3 %v879_v22  ;;  %v945_v19 = vld [vmem:[%s2998_s2 + $0x8e0] sm:$0xff] }
  0xbc   :  { %1298 = vmatpush.msra.mxu0 %v899_v23  ;;  %1317 = vmatpush.msra.mxu1 %v916_v24  ;;  %v885_v22 = vld [vmem:[%s2998_s2 + $0x700] sm:$0xff]  ;;  %v902_v23 = vld [vmem:[%s2998_s2 + $0x788] sm:$0xff]  ;;  %v927_v24 = vld [vmem:[%s2998_s2 + $0x850] sm:$0xff] }
  0xbd   :  { %1264 = vmatpush.msrb.mxu2 %v861_v25  ;;  %1283 = vmatpush.msrb.mxu3 %v878_v26  ;;  %v944_v25 = vld [vmem:[%s2998_s2 + $0x8d8] sm:$0xff] }
  0xbe   :  { %1299 = vmatpush.msra.mxu0 %v898_v27  ;;  %1318 = vmatpush.msra.mxu1 %v915_v28  ;;  %v496_v15 = vpop.f32.mrf.mxu2  ;;  %v964_v26 = vld [vmem:[%s2998_s2 + $0x978] sm:$0xff]  ;;  %v901_v28 = vld [vmem:[%s2998_s2 + $0x780] sm:$0xff] }
  0xbf   :  { %1265 = vmatpush.msrb.mxu2 %v860_v29  ;;  %1284 = vmatpush.msrb.mxu3 %v877_v30  ;;  %v653_v20 = vmax.f32 %v496_v15, 0.0  ;;  %v926_v29 = vld [vmem:[%s2998_s2 + $0x848] sm:$0xff]  ;;  %v943_v30 = vld [vmem:[%s2998_s2 + $0x8d0] sm:$0xff]  ;;  %v952_v15 = vld [vmem:[%s2998_s2 + $0x918] sm:$0xff] }
  0xc0   :  { %1300 = vmatpush.msra.mxu0 %v897_v31  ;;  %1319 = vmatpush.msra.mxu1 %v914_v32  ;;  %v963_v31 = vld [vmem:[%s2998_s2 + $0x970] sm:$0xff]  ;;  %v980_v32 = vld [vmem:[%s2998_s2 + $0x9f8] sm:$0xff] }
  0xc1   :  { %1266 = vmatpush.msrb.mxu2 %v859_v33  ;;  %1285 = vmatpush.msrb.mxu3 %v876_v34  ;;  %v516_v21 = vpop.f32.mrf.mxu3  ;;  %v925_v33 = vld [vmem:[%s2998_s2 + $0x840] sm:$0xff]  ;;  %v942_v34 = vld [vmem:[%s2998_s2 + $0x8c8] sm:$0xff] }
  0xc2   :  { %1301 = vmatpush.msra.mxu0 %v896_v35  ;;  %1320 = vmatpush.msra.mxu1 %v913_v36  ;;  %v654_v27 = vmax.f32 %v516_v21, 0.0  ;;  %v962_v35 = vld [vmem:[%s2998_s2 + $0x968] sm:$0xff]  ;;  %v979_v36 = vld [vmem:[%s2998_s2 + $0x9f0] sm:$0xff]  ;;  %v993_v21 = vld [vmem:[%s2998_s2 + $0xa60] sm:$0xff] }
  0xc3   :  { %1267 = vmatpush.msrb.mxu2 %v858_v37  ;;  %1286 = vmatpush.msrb.mxu3 %v875_v38  ;;  %v924_v37 = vld [vmem:[%s2998_s2 + $0x838] sm:$0xff]  ;;  %v941_v38 = vld [vmem:[%s2998_s2 + $0x8c0] sm:$0xff] }
  0xc4   :  { %1302 = vmatpush.msra.mxu0 %v895_v39  ;;  %1321 = vmatpush.msra.mxu1 %v912_v40  ;;  %v961_v39 = vld [vmem:[%s2998_s2 + $0x960] sm:$0xff]  ;;  %v978_v40 = vld [vmem:[%s2998_s2 + $0x9e8] sm:$0xff] }
  0xc5   :  { %1268 = vmatpush.msrb.mxu2 %v857_v41  ;;  %1287 = vmatpush.msrb.mxu3 %v874_v42  ;;  %v923_v41 = vld [vmem:[%s2998_s2 + $0x830] sm:$0xff]  ;;  %v940_v42 = vld [vmem:[%s2998_s2 + $0x8b8] sm:$0xff] }
  0xc6   :  { %1303 = vmatpush.msra.mxu0 %v894_v43  ;;  %1322 = vmatpush.msra.mxu1 %v911_v44  ;;  %v960_v43 = vld [vmem:[%s2998_s2 + $0x958] sm:$0xff]  ;;  %v977_v44 = vld [vmem:[%s2998_s2 + $0x9e0] sm:$0xff] }
  0xc7   :  { %1269 = vmatpush.msrb.mxu2 %v856_v45  ;;  %1288 = vmatpush.msrb.mxu3 %v873_v46  ;;  %v922_v45 = vld [vmem:[%s2998_s2 + $0x828] sm:$0xff]  ;;  %v939_v46 = vld [vmem:[%s2998_s2 + $0x8b0] sm:$0xff] }
  0xc8   :  { %1304 = vmatpush.msra.mxu0 %v893_v47  ;;  %1323 = vmatpush.msra.mxu1 %v910_v48  ;;  %v959_v47 = vld [vmem:[%s2998_s2 + $0x950] sm:$0xff]  ;;  %v976_v48 = vld [vmem:[%s2998_s2 + $0x9d8] sm:$0xff] }
  0xc9   :  { %1270 = vmatpush.msrb.mxu2 %v855_v49  ;;  %1289 = vmatpush.msrb.mxu3 %v872_v50  ;;  %v921_v49 = vld [vmem:[%s2998_s2 + $0x820] sm:$0xff]  ;;  %v938_v50 = vld [vmem:[%s2998_s2 + $0x8a8] sm:$0xff] }
  0xca   :  { %1305 = vmatpush.msra.mxu0 %v892_v51  ;;  %1324 = vmatpush.msra.mxu1 %v909_v52  ;;  %v958_v51 = vld [vmem:[%s2998_s2 + $0x948] sm:$0xff]  ;;  %v975_v52 = vld [vmem:[%s2998_s2 + $0x9d0] sm:$0xff] }
  0xcb   :  { %1271 = vmatpush.msrb.mxu2 %v854_v54  ;;  %1290 = vmatpush.msrb.mxu3 %v871_v55  ;;  %v937_v54 = vld [vmem:[%s2998_s2 + $0x8a0] sm:$0xff] }
  0xcc   :  { %1306 = vmatpush.msra.mxu0 %v891_v56  ;;  %1325 = vmatpush.msra.mxu1 %v908_v57  ;;  %v957_v55 = vld [vmem:[%s2998_s2 + $0x940] sm:$0xff]  ;;  %v974_v56 = vld [vmem:[%s2998_s2 + $0x9c8] sm:$0xff]  ;;  %v919_v57 = vld [vmem:[%s2998_s2 + $0x810] sm:$0xff] }
  0xcd   :  { %1272 = vmatpush.msrb.mxu2 %v853_v59  ;;  %1291 = vmatpush.msrb.mxu3 %v870_v60  ;;  %v956_v59 = vld [vmem:[%s2998_s2 + $0x938] sm:$0xff]  ;;  %v973_v60 = vld [vmem:[%s2998_s2 + $0x9c0] sm:$0xff] }
  0xce   :  { %1307 = vmatpush.msra.mxu0 %v890_v62  ;;  %1326 = vmatpush.msra.mxu1 %v907_v63  ;;  %v918_v62 = vld [vmem:[%s2998_s2 + $0x808] sm:$0xff]  ;;  %v935_v63 = vld [vmem:[%s2998_s2 + $0x890] sm:$0xff] }
  0xcf   :  { %1273 = vmatmul.f32.vlgmr.msrb.gmra.mxu2 %v651_v61  ;;  %1292 = vmatpush.msrb.mxu3 %v869_v0  ;;  %v536_v61 = vpop.f32.mrf.mxu0  ;;  %v955_v0 = vld [vmem:[%s2998_s2 + $0x930] sm:$0xff] }
  0xd0   :  { %1337 = vmatpush.msra.mxu2 %v932_v2  ;;  %1308 = vmatpush.msra.mxu0 %v889_v3  ;;  %v556_v2 = vpop.f32.mrf.mxu1  ;;  %v917_v3 = vld [vmem:[%s2998_s2 + $0x800] sm:$0xff] }
  0xd1   :  { %1327 = vmatpush.msra.mxu1 %v906_v4  ;;  %1293 = vmatmul.f32.vlgmr.msrb.gmra.mxu3 %v652_v1  ;;  %v972_v1 = vld [vmem:[%s2998_s2 + $0x9b8] sm:$0xff]  ;;  %v934_v4 = vld [vmem:[%s2998_s2 + $0x888] sm:$0xff] }
  0xd2   :  { %1338 = vmatpush.msra.mxu2 %v931_v5  ;;  %1357 = vmatpush.msra.mxu3 %v948_v6  ;;  %v655_v5 = vmax.f32 %v536_v61, 0.0  ;;  %v954_v6 = vld [vmem:[%s2998_s2 + $0x928] sm:$0xff]  ;;  %v1507_v61 = vld [vmem:[%s2999_s3] ss:$0 sm:$0xff] }
  0xd3   :  { %1309 = vmatpush.msra.mxu0 %v888_v10  ;;  %1328 = vmatpush.msra.mxu1 %v905_v7  ;;  %v971_v10 = vld [vmem:[%s2998_s2 + $0x9b0] sm:$0xff]  ;;  %v933_v7 = vld [vmem:[%s2998_s2 + $0x880] sm:$0xff] }
  0xd4   :  { %1339 = vmatpush.msra.mxu2 %v930_v8  ;;  %1358 = vmatpush.msra.mxu3 %v947_v9  ;;  %v656_v8 = vmax.f32 %v556_v2, 0.0  ;;  %v996_v9 = vld [vmem:[%s2998_s2 + $0xa78] sm:$0xff] }
  0xd5   :  { %1310 = vmatpush.msra.mxu0 %v887_v11  ;;  %1329 = vmatpush.msra.mxu1 %v904_v12  ;;  %v953_v11 = vld [vmem:[%s2998_s2 + $0x920] sm:$0xff]  ;;  %v970_v12 = vld [vmem:[%s2998_s2 + $0x9a8] sm:$0xff] }
  0xd6   :  { %1340 = vmatpush.msra.mxu2 %v929_v13  ;;  %1359 = vmatpush.msra.mxu3 %v946_v14  ;;  %v995_v13 = vld [vmem:[%s2998_s2 + $0xa70] sm:$0xff]  ;;  %v1012_v14 = vld [vmem:[%s2998_s2 + $0xaf8] sm:$0xff] }
  0xd7   :  { %1311 = vmatpush.msra.mxu0 %v886_v16  ;;  %1330 = vmatpush.msra.mxu1 %v903_v17  ;;  %v969_v16 = vld [vmem:[%s2998_s2 + $0x9a0] sm:$0xff]  ;;  %v994_v17 = vld [vmem:[%s2998_s2 + $0xa68] sm:$0xff] }
  0xd8   :  { %1341 = vmatpush.msra.mxu2 %v928_v18  ;;  %1360 = vmatpush.msra.mxu3 %v945_v19  ;;  %v1011_v18 = vld [vmem:[%s2998_s2 + $0xaf0] sm:$0xff] }
  0xd9   :  { %1312 = vmatpush.msra.mxu0 %v885_v22  ;;  %1331 = vmatpush.msra.mxu1 %v902_v23  ;;  %v951_v19 = vld [vmem:[%s2998_s2 + $0x910] sm:$0xff]  ;;  %v1010_v22 = vld [vmem:[%s2998_s2 + $0xae8] sm:$0xff] }
  0xda   :  { %1313 = vmatmul.f32.vlgmr.msra.gmra.mxu0 %v653_v20  ;;  %1342 = vmatpush.msra.mxu2 %v927_v24  ;;  %v968_v20 = vld [vmem:[%s2998_s2 + $0x998] sm:$0xff]  ;;  %v950_v24 = vld [vmem:[%s2998_s2 + $0x908] sm:$0xff] }
  0xdb   :  { %1361 = vmatpush.msra.mxu3 %v944_v25  ;;  %1377 = vmatpush.msrb.mxu0 %v964_v26  ;;  %v967_v25 = vld [vmem:[%s2998_s2 + $0x990] sm:$0xff]  ;;  %v992_v26 = vld [vmem:[%s2998_s2 + $0xa58] sm:$0xff] }
  0xdc   :  { %1332 = vmatpush.msra.mxu1 %v901_v28  ;;  %1343 = vmatpush.msra.mxu2 %v926_v29 }
  0xdd   :  { %1333 = vmatmul.f32.vlgmr.msra.gmra.mxu1 %v654_v27  ;;  %1362 = vmatpush.msra.mxu3 %v943_v30  ;;  %v1009_v27 = vld [vmem:[%s2998_s2 + $0xae0] sm:$0xff] }
  0xde   :  { %1378 = vmatpush.msrb.mxu0 %v963_v31  ;;  %1397 = vmatpush.msrb.mxu1 %v980_v32  ;;  %v949_v30 = vld [vmem:[%s2998_s2 + $0x900] sm:$0xff]  ;;  %v966_v31 = vld [vmem:[%s2998_s2 + $0x988] sm:$0xff]  ;;  %v991_v32 = vld [vmem:[%s2998_s2 + $0xa50] sm:$0xff] }
  0xdf   :  { %1344 = vmatpush.msra.mxu2 %v925_v33  ;;  %1363 = vmatpush.msra.mxu3 %v942_v34  ;;  %v1008_v34 = vld [vmem:[%s2998_s2 + $0xad8] sm:$0xff] }
  0xe0   :  { %1379 = vmatpush.msrb.mxu0 %v962_v35  ;;  %1398 = vmatpush.msrb.mxu1 %v979_v36  ;;  %v965_v35 = vld [vmem:[%s2998_s2 + $0x980] sm:$0xff]  ;;  %v990_v36 = vld [vmem:[%s2998_s2 + $0xa48] sm:$0xff] }
  0xe1   :  { %1345 = vmatpush.msra.mxu2 %v924_v37  ;;  %1364 = vmatpush.msra.mxu3 %v941_v38  ;;  %v576_v23 = vpop.f32.mrf.mxu2  ;;  %v1007_v37 = vld [vmem:[%s2998_s2 + $0xad0] sm:$0xff]  ;;  %v989_v38 = vld [vmem:[%s2998_s2 + $0xa40] sm:$0xff] }
  0xe2   :  { %1380 = vmatpush.msrb.mxu0 %v961_v39  ;;  %1399 = vmatpush.msrb.mxu1 %v978_v40  ;;  %v657_v29 = vmax.f32 %v576_v23, 0.0  ;;  %v1006_v39 = vld [vmem:[%s2998_s2 + $0xac8] sm:$0xff]  ;;  %v988_v40 = vld [vmem:[%s2998_s2 + $0xa38] sm:$0xff] }
  0xe3   :  { %1346 = vmatpush.msra.mxu2 %v923_v41  ;;  %1365 = vmatpush.msra.mxu3 %v940_v42  ;;  %v596_v28 = vpop.f32.mrf.mxu3  ;;  %v1005_v41 = vld [vmem:[%s2998_s2 + $0xac0] sm:$0xff]  ;;  %v987_v42 = vld [vmem:[%s2998_s2 + $0xa30] sm:$0xff] }
  0xe4   :  { %1381 = vmatpush.msrb.mxu0 %v960_v43  ;;  %1400 = vmatpush.msrb.mxu1 %v977_v44  ;;  %v658_v33 = vmax.f32 %v596_v28, 0.0  ;;  %v1004_v43 = vld [vmem:[%s2998_s2 + $0xab8] sm:$0xff]  ;;  %v986_v44 = vld [vmem:[%s2998_s2 + $0xa28] sm:$0xff] }
  0xe5   :  { %1347 = vmatpush.msra.mxu2 %v922_v45  ;;  %1366 = vmatpush.msra.mxu3 %v939_v46  ;;  %v1003_v45 = vld [vmem:[%s2998_s2 + $0xab0] sm:$0xff]  ;;  %v985_v46 = vld [vmem:[%s2998_s2 + $0xa20] sm:$0xff] }
  0xe6   :  { %1382 = vmatpush.msrb.mxu0 %v959_v47  ;;  %1401 = vmatpush.msrb.mxu1 %v976_v48  ;;  %v1002_v47 = vld [vmem:[%s2998_s2 + $0xaa8] sm:$0xff]  ;;  %v984_v48 = vld [vmem:[%s2998_s2 + $0xa18] sm:$0xff] }
  0xe7   :  { %1348 = vmatpush.msra.mxu2 %v921_v49  ;;  %1367 = vmatpush.msra.mxu3 %v938_v50  ;;  %v1001_v49 = vld [vmem:[%s2998_s2 + $0xaa0] sm:$0xff]  ;;  %v983_v50 = vld [vmem:[%s2998_s2 + $0xa10] sm:$0xff] }
  0xe8   :  { %1383 = vmatpush.msrb.mxu0 %v958_v51  ;;  %1402 = vmatpush.msrb.mxu1 %v975_v52  ;;  %v1000_v51 = vld [vmem:[%s2998_s2 + $0xa98] sm:$0xff]  ;;  %v616_v52 = vpop.f32.mrf.mxu0 }
  0xe9   :  { %1349 = vmatpush.msra.mxu2 %v920_v53  ;;  %1368 = vmatpush.msra.mxu3 %v937_v54  ;;  %v982_v53 = vld [vmem:[%s2998_s2 + $0xa08] sm:$0xff]  ;;  %v999_v54 = vld [vmem:[%s2998_s2 + $0xa90] sm:$0xff] }
  0xea   :  { %1384 = vmatpush.msrb.mxu0 %v957_v55  ;;  %1403 = vmatpush.msrb.mxu1 %v974_v56  ;;  %v659_v55 = vmax.f32 %v616_v52, 0.0  ;;  %v636_v56 = vpop.f32.mrf.mxu1 }
  0xeb   :  { %1350 = vmatpush.msra.mxu2 %v919_v57  ;;  %1369 = vmatpush.msra.mxu3 %v936_v58  ;;  %v981_v57 = vld [vmem:[%s2998_s2 + $0xa00] sm:$0xff]  ;;  %v998_v58 = vld [vmem:[%s2998_s2 + $0xa88] sm:$0xff] }
  0xec   :  { %1385 = vmatpush.msrb.mxu0 %v956_v59  ;;  %1404 = vmatpush.msrb.mxu1 %v973_v60  ;;  %v660_v59 = vmax.f32 %v636_v56, 0.0  ;;  %v997_v60 = vld [vmem:[%s2998_s2 + $0xa80] sm:$0xff] }
  0xed   :  { %1351 = vmatpush.msra.mxu2 %v918_v62  ;;  %1370 = vmatpush.msra.mxu3 %v935_v63 }
  0xee   :  { %1386 = vmatpush.msrb.mxu0 %v955_v0  ;;  %1405 = vmatpush.msrb.mxu1 %v972_v1 }
  0xef   :  { %1352 = vmatpush.msra.mxu2 %v917_v3  ;;  %1371 = vmatpush.msra.mxu3 %v934_v4 }
  0xf0   :  { %1387 = vmatpush.msrb.mxu0 %v954_v6  ;;  %1406 = vmatpush.msrb.mxu1 %v971_v10 }
  0xf1   :  { %1353 = vmatmul.f32.vlgmr.msra.gmra.mxu2 %v655_v5  ;;  %1372 = vmatpush.msra.mxu3 %v933_v7 }
  0xf2   :  { %1417 = vmatpush.msrb.mxu2 %v996_v9  ;;  %1388 = vmatpush.msrb.mxu0 %v953_v11 }
  0xf3   :  { %1407 = vmatpush.msrb.mxu1 %v970_v12  ;;  %1373 = vmatmul.f32.vlgmr.msra.gmra.mxu3 %v656_v8 }
  0xf4   :  { %1418 = vmatpush.msrb.mxu2 %v995_v13  ;;  %1437 = vmatpush.msrb.mxu3 %v1012_v14 }
  0xf5   :  { %1389 = vmatpush.msrb.mxu0 %v952_v15  ;;  %1408 = vmatpush.msrb.mxu1 %v969_v16 }
  0xf6   :  { %1419 = vmatpush.msrb.mxu2 %v994_v17  ;;  %1438 = vmatpush.msrb.mxu3 %v1011_v18 }
  0xf7   :  { %1390 = vmatpush.msrb.mxu0 %v951_v19  ;;  %1409 = vmatpush.msrb.mxu1 %v968_v20 }
  0xf8   :  { %1420 = vmatpush.msrb.mxu2 %v993_v21  ;;  %1439 = vmatpush.msrb.mxu3 %v1010_v22 }
  0xf9   :  { %1391 = vmatpush.msrb.mxu0 %v950_v24  ;;  %1410 = vmatpush.msrb.mxu1 %v967_v25 }
  0xfa   :  { %1421 = vmatpush.msrb.mxu2 %v992_v26  ;;  %1440 = vmatpush.msrb.mxu3 %v1009_v27 }
  0xfb   :  { %1392 = vmatpush.msrb.mxu0 %v949_v30  ;;  %1411 = vmatpush.msrb.mxu1 %v966_v31 }
  0xfc   :  { %1393 = vmatmul.f32.vlgmr.msrb.gmra.mxu0 %v657_v29  ;;  %1422 = vmatpush.msrb.mxu2 %v991_v32 }
  0xfd   :  { %1441 = vmatpush.msrb.mxu3 %v1008_v34  ;;  %1412 = vmatpush.msrb.mxu1 %v965_v35 }
  0xfe   :  { %1413 = vmatmul.f32.vlgmr.msrb.gmra.mxu1 %v658_v33  ;;  %1423 = vmatpush.msrb.mxu2 %v990_v36 }
  0xff   :  { %1442 = vmatpush.msrb.mxu3 %v1007_v37 }
 0x100   :  { %1424 = vmatpush.msrb.mxu2 %v989_v38 }
 0x101   :  { %1443 = vmatpush.msrb.mxu3 %v1006_v39 }
 0x102   :  { %1425 = vmatpush.msrb.mxu2 %v988_v40 }
 0x103   :  { %1444 = vmatpush.msrb.mxu3 %v1005_v41 }
 0x104   :  { %1426 = vmatpush.msrb.mxu2 %v987_v42 }
 0x105   :  { %1445 = vmatpush.msrb.mxu3 %v1004_v43 }
 0x106   :  { %1427 = vmatpush.msrb.mxu2 %v986_v44 }
 0x107   :  { %1446 = vmatpush.msrb.mxu3 %v1003_v45 }
 0x108   :  { %1428 = vmatpush.msrb.mxu2 %v985_v46 }
 0x109   :  { %1447 = vmatpush.msrb.mxu3 %v1002_v47 }
 0x10a   :  { %1429 = vmatpush.msrb.mxu2 %v984_v48 }
 0x10b   :  { %1448 = vmatpush.msrb.mxu3 %v1001_v49 }
 0x10c   :  { %1430 = vmatpush.msrb.mxu2 %v983_v50 }
 0x10d   :  { %1449 = vmatpush.msrb.mxu3 %v1000_v51 }
 0x10e   :  { %1431 = vmatpush.msrb.mxu2 %v982_v53  ;;  %v1034_v62 = vpop.f32.mrf.mxu2  ;;  %v1054_v0 = vpop.f32.mrf.mxu3 }
 0x10f   :  { %1450 = vmatpush.msrb.mxu3 %v999_v54  ;;  %v1035_v63 = vadd.f32 %v1507_v61, %v1034_v62 }
 0x110   :  { %1432 = vmatpush.msrb.mxu2 %v981_v57 }
 0x111   :  { %1451 = vmatpush.msrb.mxu3 %v998_v58  ;;  %1433 = vmatmul.f32.vlgmr.msrb.gmra.mxu2 %v659_v55  ;;  %v1055_v1 = vadd.f32 %v1054_v0, %v1035_v63 }
 0x112   :  { %v1074_v2 = vpop.f32.mrf.mxu0  ;;  %v1094_v4 = vpop.f32.mrf.mxu1 }
 0x113   :  { %1452 = vmatpush.msrb.mxu3 %v997_v60  ;;  %v1075_v3 = vadd.f32 %v1074_v2, %v1055_v1 }
 0x114   :  { %1453 = vmatmul.f32.vlgmr.msrb.gmra.mxu3 %v660_v59 }
 0x115   :  { %v1095_v6 = vadd.f32 %v1094_v4, %v1075_v3 }
 0x122   :  { %v1114_v5 = vpop.f32.mrf.mxu2  ;;  %v1134_v7 = vpop.f32.mrf.mxu3 }
 0x123   :  { %v1115_v10 = vadd.f32 %v1114_v5, %v1095_v6 }
 0x125   :  { %v1135_v8 = vadd.f32 %v1134_v7, %v1115_v10  ;;  %v1154_v9 = vpop.f32.mrf.mxu0 }
 0x127   :  { %v1155_v11 = vadd.f32 %v1154_v9, %v1135_v8 }
 0x128   :  { %v1174_v12 = vpop.f32.mrf.mxu1 }
 0x129   :  { %v1175_v14 = vadd.f32 %v1174_v12, %v1155_v11 }
 0x130   :  { %v1194_v13 = vpop.f32.mrf.mxu2 }
 0x131   :  { %v1195_v15 = vadd.f32 %v1194_v13, %v1175_v14 }
 0x132   :  { %v1214_v16 = vpop.f32.mrf.mxu3 }
 0x133   :  { %v1215_v17 = vadd.f32 %v1214_v16, %v1195_v15 }
 0x135   :  { %v1234_v18 = vpop.f32.mrf.mxu0 }
 0x136   :  { %v1235_v19 = vadd.f32 %v1234_v18, %v1215_v17 }
 0x138   :  { %v1254_v20 = vpop.f32.mrf.mxu1 }
 0x139   :  { %v1255_v22 = vadd.f32 %v1254_v20, %v1235_v19 }
 0x152   :  { %v1274_v21 = vpop.f32.mrf.mxu2 }
 0x153   :  { %v1275_v23 = vadd.f32 %v1274_v21, %v1255_v22 }
 0x154   :  { %v1294_v24 = vpop.f32.mrf.mxu3 }
 0x155   :  { %v1295_v25 = vadd.f32 %v1294_v24, %v1275_v23 }
 0x157   :  { %v1314_v26 = vpop.f32.mrf.mxu0 }
 0x158   :  { %v1315_v27 = vadd.f32 %v1314_v26, %v1295_v25 }
 0x15a   :  { %v1334_v28 = vpop.f32.mrf.mxu1 }
 0x15b   :  { %v1335_v30 = vadd.f32 %v1334_v28, %v1315_v27 }
 0x174   :  { %v1354_v29 = vpop.f32.mrf.mxu2 }
 0x175   :  { %v1355_v31 = vadd.f32 %v1354_v29, %v1335_v30 }
 0x176   :  { %v1374_v32 = vpop.f32.mrf.mxu3 }
 0x177   :  { %v1375_v33 = vadd.f32 %v1374_v32, %v1355_v31 }
 0x179   :  { %v1394_v34 = vpop.f32.mrf.mxu0 }
 0x17a   :  { %v1395_v35 = vadd.f32 %v1394_v34, %v1375_v33 }
 0x17b   :  { %v1414_v36 = vpop.f32.mrf.mxu1 }
 0x17c   :  { %v1415_v37 = vadd.f32 %v1414_v36, %v1395_v35 }
 0x194   :  { %v1434_v38 = vpop.f32.mrf.mxu2 }
 0x195   :  { %v1435_v39 = vadd.f32 %v1434_v38, %v1415_v37 }
 0x197   :  { %v1454_v40 = vpop.f32.mrf.mxu3 }
 0x198   :  { %v1455_v41 = vadd.f32 %v1454_v40, %v1435_v39 }
 0x19a   :  { %v1457_v42 = vmax.f32 %v1455_v41, 0.0 }
 0x19c   :  { %1458 = vst [vmem:[%s3000_s4] sm:$0xff] %v1457_v42 }

</bundles_post_ra>
